<compile_context>
chip_gen: v7x
topology: tpu7x:2x2x1
jax: 0.10.0
libtpu: 0.0.40
codegen_flags: <defaults>
</compile_context>

<pallas_src>
import math

import jax
import jax.numpy as jnp
from jax.experimental import pallas as pl
from jax.experimental.pallas import tpu as pltpu

LANE = 128
SUBLANE = 8
MIB = 1024 * 1024


def _round_up(x, m):
    return (x + m - 1) // m * m


def _cdiv(a, b):
    return -(-a // b)


def make_attention_kernel(lk_valid):
    """Kernel factory. lk_valid = number of real (unpadded) key rows; zero-padded key
    rows (which would pick up the K bias) are masked out of the softmax statically."""

    def attention_kernel(x1_ref, x2_ref,
                         wq_ref, bq_ref,
                         wkv_ref, bkv_ref,
                         wf_ref, bf_ref,
                         o_ref):
        bt, lq, ch = x1_ref.shape
        _, lk, ld = x2_ref.shape
        e_pad = wq_ref.shape[1]
        out_w = wf_ref.shape[1]

        # --- Q and fused K|V projections: batch fused into the MXU M dimension,
        #     bf16 operands (weights pre-cast, activations cast here), f32 accumulate.
        x1 = x1_ref[...].reshape(bt * lq, ch).astype(wq_ref.dtype)
        x2 = x2_ref[...].reshape(bt * lk, ld).astype(wkv_ref.dtype)

        q = jnp.dot(x1, wq_ref[...], preferred_element_type=jnp.float32) + bq_ref[...]
        # One x2 @ [Wk*scale | Wv] matmul (N = 2*E_pad) fills the 256-wide MXU on
        # v6e/v7x and halves weight pushes / result pops; split by static lane slice.
        kv = jnp.dot(x2, wkv_ref[...], preferred_element_type=jnp.float32) + bkv_ref[...]
        k = kv[:, :e_pad]
        v = kv[:, e_pad:]

        qb = q.reshape(bt, lq, e_pad)
        kb = k.reshape(bt, lk, e_pad)
        vb = v.reshape(bt, lk, e_pad)

        # --- attention (kept in f32: v5e has no bf16 VPU/EUP; these contractions are
        #     small relative to the projections at these shapes).
        # TODO(synk): bundle-dump check whether this contraction lowers with an XLU
        # vxpose of kb at large Lk; if so, produce K pre-transposed per step.
        scores = jnp.einsum("bqe,bke->bqk", qb, kb,
                            preferred_element_type=jnp.float32)       # (Bt, Lq, Lk)
        if lk_valid < lk:  # static branch: mask zero-padded key rows out of softmax
            key_idx = jax.lax.broadcasted_iota(jnp.int32, scores.shape, 2)
            scores = jnp.where(key_idx < lk_valid, scores, -1e30)

        # numerically-stable softmax over the last axis (denominator on the EUP)
        m = jnp.max(scores, axis=-1, keepdims=True)
        p = jnp.exp(scores - m)
        attn = p * pl.reciprocal(jnp.sum(p, axis=-1, keepdims=True), approx=True)

        values = jnp.einsum("bqk,bke->bqe", attn, vb,
                            preferred_element_type=jnp.float32)       # (Bt, Lq, E_pad)
        sum_out = (values + qb).reshape(bt * lq, e_pad)               # residual, batch-fused

        # --- final projection, batch fused into M (bf16 operands, f32 accumulate)
        proj = jnp.dot(sum_out.astype(wf_ref.dtype), wf_ref[...],
                       preferred_element_type=jnp.float32) + bf_ref[...]
        o_ref[...] = proj.reshape(bt, lq, out_w).astype(o_ref.dtype)

    return attention_kernel


def prepare_kernel_params(params, *, use_bf16=True):
    """One-time constant transforms of the logical params:
      - zero-pad E output features to a full 128-lane width (lane-dense vregs)
      - fold 1/sqrt(dk) into the K projection (K only feeds the scores, so the
        residual `values + q` path is untouched)
      - fuse K|V into a single (Ld, 2*E_pad) weight so one matmul fills the MXU
      - cast matmul weights to bf16 (biases stay f32; accumulation stays f32)
      - keep both a logical-width and a 128-padded final projection."""
    wq, bq = params["q"]; wk, bk = params["k"]; wv, bv = params["v"]; wf, bf = params["final"]
    E = wq.shape[1]
    P = wf.shape[1]
    E_pad = _round_up(E, LANE)
    P_pad = _round_up(P, LANE)
    scale = 1.0 / math.sqrt(E)
    w_dtype = jnp.bfloat16 if use_bf16 else jnp.float32

    def pad_cols(w, b, out_pad):
        w = jnp.pad(w, ((0, 0), (0, out_pad - w.shape[1])))
        b = jnp.pad(b, ((0, 0), (0, out_pad - b.shape[1])))
        return w, b

    wq_p, bq_p = pad_cols(wq, bq, E_pad)
    wk_p, bk_p = pad_cols(wk * scale, bk * scale, E_pad)
    wv_p, bv_p = pad_cols(wv, bv, E_pad)
    wkv = jnp.concatenate([wk_p, wv_p], axis=1)           # (Ld, 2*E_pad)
    bkv = jnp.concatenate([bk_p, bv_p], axis=1)           # (1, 2*E_pad)

    wf_rows = jnp.pad(wf, ((0, E_pad - E), (0, 0)))        # padded E rows hit zero q/v cols
    wf_pad, bf_pad = pad_cols(wf_rows, bf, P_pad)

    return {
        "q": (wq_p.astype(w_dtype), bq_p),
        "kv": (wkv.astype(w_dtype), bkv),
        "final": (wf_rows.astype(w_dtype), bf),            # logical P-wide output store
        "final_padded": (wf_pad.astype(w_dtype), bf_pad),  # lane-dense 128-wide slab
        "out_features": P,
    }


def _device_kind():
    try:
        return jax.devices()[0].device_kind.lower()
    except Exception:
        return "unknown"


def _pick_batch_tile(B, Lq, device_kind, per_batch_bytes, block_budget):
    """Largest batch tile (fused M = Bt*Lq rows per grid step), bounded by VMEM.
    v5e/v6e (single TensorCore): one big step if it fits.  v7x (two TCs): keep >=2
    balanced steps, but only if each step still gets >=128 fused rows."""
    target_rows = 512
    bt = max(1, min(B, target_rows // max(Lq, 1)))
    if "v7" in device_kind and B >= 2:
        bt_two = _cdiv(B, 2)                    # >= 2 grid steps for the two TCs
        if bt_two * Lq >= 128:
            bt = min(bt, bt_two)
    while bt > 1 and bt * per_batch_bytes > block_budget:
        bt = _cdiv(bt, 2)
    return bt


def attention_forward(x1, x2, kparams, *, batch_tile=None, pad_output=False,
                      interpret=False):
    """x1: (B, Lq, concat_hidden), x2: (B, Lk, label_dimension)
       -> (B, Lq, out_proj)   (or (B, Lq, 128-padded) when pad_output=True)."""
    B, Lq, Ch = x1.shape
    B2, Lk, Ld = x2.shape
    assert B2 == B, "x1/x2 batch mismatch"

    wq, bq = kparams["q"]
    wkv, bkv = kparams["kv"]
    wf, bf = kparams["final_padded"] if pad_output else kparams["final"]
    E_pad = wq.shape[1]
    KV_pad = wkv.shape[1]
    out_w = wf.shape[1]

    # --- pad sequence dims to sublane multiples so batch-fusing reshapes are free.
    Lq_p = _round_up(Lq, SUBLANE)
    Lk_p = _round_up(Lk, SUBLANE)
    if Lq_p != Lq:
        x1 = jnp.pad(x1, ((0, 0), (0, Lq_p - Lq), (0, 0)))
    if Lk_p != Lk:
        x2 = jnp.pad(x2, ((0, 0), (0, Lk_p - Lk), (0, 0)))

    # --- generation-aware VMEM budget -> batch tile + vmem_limit_bytes.
    kind = _device_kind()
    vmem_cap = 48 * MIB if "v7" in kind else 100 * MIB      # v7x: 64 MiB physical
    w_bytes = (wq.size * wq.dtype.itemsize + wkv.size * wkv.dtype.itemsize
               + wf.size * wf.dtype.itemsize
               + (bq.size + bkv.size + bf.size) * 4)
    # per-batch-element working set: double-buffered x1/x2/out blocks + f32 intermediates
    per_b = (2 * Lq_p * (Ch + out_w) * 4
             + 2 * Lk_p * Ld * 4
             + 2 * Lq_p * (3 * E_pad + 3 * Lk_p) * 4
             + 2 * Lk_p * 2 * KV_pad * 4)
    block_budget = max(vmem_cap - 2 * w_bytes - 8 * MIB, 4 * MIB)

    Bt = batch_tile if batch_tile is not None else _pick_batch_tile(
        B, Lq_p, kind, per_b, block_budget)
    Bt = max(1, min(Bt, B))

    steps = _cdiv(B, Bt)                   # B need not divide Bt: pad batch instead
    B_pad = steps * Bt
    if B_pad != B:
        x1 = jnp.pad(x1, ((0, B_pad - B), (0, 0), (0, 0)))
        x2 = jnp.pad(x2, ((0, B_pad - B), (0, 0), (0, 0)))

    vmem_limit = int(min(vmem_cap, max(32 * MIB, 2 * w_bytes + Bt * per_b + 8 * MIB)))

    kernel = make_attention_kernel(Lk)

    def run(weight_mode):
        def wspec(shape):
            idx = lambda b: (0,) * len(shape)   # weights are resident across the grid
            if weight_mode is None:
                return pl.BlockSpec(shape, idx)
            return pl.BlockSpec(shape, idx, pipeline_mode=weight_mode)

        return pl.pallas_call(
            kernel,
            out_shape=jax.ShapeDtypeStruct((B_pad, Lq_p, out_w), x1.dtype),
            grid_spec=pltpu.PrefetchScalarGridSpec(
                num_scalar_prefetch=0,
                grid=(steps,),
                in_specs=[
                    pl.BlockSpec((Bt, Lq_p, Ch), lambda b: (b, 0, 0)),
                    pl.BlockSpec((Bt, Lk_p, Ld), lambda b: (b, 0, 0)),
                    wspec((Ch, E_pad)),
                    wspec((1, E_pad)),
                    wspec((Ld, KV_pad)),
                    wspec((1, KV_pad)),
                    wspec((E_pad, out_w)),
                    wspec((1, out_w)),
                ],
                out_specs=pl.BlockSpec((Bt, Lq_p, out_w), lambda b: (b, 0, 0)),
            ),
            compiler_params=pltpu.CompilerParams(
                dimension_semantics=("parallel",),
                vmem_limit_bytes=vmem_limit,
            ),
            interpret=interpret,
        )(x1, x2, wq, bq, wkv, bkv, wf, bf)

    # Constant-index weights never change between grid steps -> single-buffer them
    # (halves resident weight VMEM; matters most under v7x's 64 MiB).  Fall back
    # cleanly if this jax build rejects Buffered(1) on a pallas_call BlockSpec.
    try:
        out = run(pl.Buffered(1))
    except Exception:
        out = run(None)

    if B_pad != B or Lq_p != Lq:
        out = out[:B, :Lq]
    return out


def init_params(key, concat_hidden, label_dimension, embedding_size, out_proj):
    """Deterministic init mimicking nn.Linear default (uniform +/- 1/sqrt(fan_in)).
    Weights stored as (in_features, out_features) so the kernel can do x @ W."""
    def linear(k, fan_in, fan_out):
        kw, kb = jax.random.split(k)
        bound = 1.0 / math.sqrt(fan_in)
        w = jax.random.uniform(kw, (fan_in, fan_out), jnp.float32, -bound, bound)
        b = jax.random.uniform(kb, (1, fan_out), jnp.float32, -bound, bound)
        return w, b

    k1, k2, k3, k4 = jax.random.split(key, 4)
    return {
        "q": linear(k1, concat_hidden, embedding_size),
        "k": linear(k2, label_dimension, embedding_size),
        "v": linear(k3, label_dimension, embedding_size),
        "final": linear(k4, embedding_size, out_proj),
    }


def attention_reference(x1, x2, params):
    """Pure-JAX f32 reference on the original (unpadded, unscaled, unfused) params."""
    wq, bq = params["q"]; wk, bk = params["k"]; wv, bv = params["v"]; wf, bf = params["final"]
    q = x1 @ wq + bq
    k = x2 @ wk + bk
    v = x2 @ wv + bv
    scores = jnp.einsum("bqe,bke->bqk", q, k) / math.sqrt(k.shape[-1])
    attn = jax.nn.softmax(scores, axis=-1)
    values = jnp.einsum("bqk,bke->bqe", attn, v)
    return (values + q) @ wf + bf


if __name__ == "__main__":
    # Small, module-consistent shapes; with the new tiling the whole batch runs in a
    # single grid step (fused M = 64 rows) on v5e/v6e.
    B, Lq, Lk = 8, 8, 8
    concat_hidden = 32      # in-features of self.q  (x_1 last dim)
    label_dimension = 16    # in-features of self.k / self.v  (x_2 last dim)
    embedding_size = 32
    out_proj = 32
    # NOTE: the module's 'heads' kwarg is stored but unused in the PyTorch forward; ignored.

    key = jax.random.PRNGKey(0)
    kp, k1, k2 = jax.random.split(key, 3)
    params = init_params(kp, concat_hidden, label_dimension, embedding_size, out_proj)
    kparams = prepare_kernel_params(params)   # one-time pad + scale-fold + K|V fuse + bf16
    x1 = jax.random.normal(k1, (B, Lq, concat_hidden), jnp.float32)
    x2 = jax.random.normal(k2, (B, Lk, label_dimension), jnp.float32)

    out = attention_forward(x1, x2, kparams)
    out = jax.block_until_ready(out)

    ref = attention_reference(x1, x2, params)
    assert out.shape == (B, Lq, out_proj), f"bad output shape {out.shape}"
    # loose tolerance: bf16 MXU operands + EUP approx-reciprocal softmax denominator
    assert jnp.allclose(out, ref, atol=2e-2, rtol=2e-2), "mismatch vs JAX reference"
    print("KERNEL_OK")
</pallas_src>

<mosaic_0001>
module attributes {stable_mosaic.version = 11 : i64} {
  func.func @attention_kernel(%arg0: i32, %arg1: memref<8x8x32xf32, #tpu.memory_space<vmem>>, %arg2: memref<8x8x16xf32, #tpu.memory_space<vmem>>, %arg3: memref<32x128xbf16, #tpu.memory_space<vmem>>, %arg4: memref<1x128xf32, #tpu.memory_space<vmem>>, %arg5: memref<16x256xbf16, #tpu.memory_space<vmem>>, %arg6: memref<1x256xf32, #tpu.memory_space<vmem>>, %arg7: memref<128x32xbf16, #tpu.memory_space<vmem>>, %arg8: memref<1x32xf32, #tpu.memory_space<vmem>>, %arg9: memref<8x8x32xf32, #tpu.memory_space<vmem>>) attributes {dimension_semantics = [#tpu.dimension_semantics<parallel>], iteration_bounds = array<i64: 1>, scalar_prefetch = 0 : i64, scratch_operands = 0 : i64, tpu.core_type = #tpu.core_type<tc>, window_params = [{transform_indices = @transform_0, window_bounds = array<i64: 8, 8, 32>}, {transform_indices = @transform_1, window_bounds = array<i64: 8, 8, 16>}, {pipeline_mode = #tpu.pipeline_mode<synchronous>, transform_indices = @transform_2, window_bounds = array<i64: 32, 128>}, {pipeline_mode = #tpu.pipeline_mode<synchronous>, transform_indices = @transform_3, window_bounds = array<i64: 1, 128>}, {pipeline_mode = #tpu.pipeline_mode<synchronous>, transform_indices = @transform_4, window_bounds = array<i64: 16, 256>}, {pipeline_mode = #tpu.pipeline_mode<synchronous>, transform_indices = @transform_5, window_bounds = array<i64: 1, 256>}, {pipeline_mode = #tpu.pipeline_mode<synchronous>, transform_indices = @transform_6, window_bounds = array<i64: 128, 32>}, {pipeline_mode = #tpu.pipeline_mode<synchronous>, transform_indices = @transform_7, window_bounds = array<i64: 1, 32>}, {transform_indices = @transform_8, window_bounds = array<i64: 8, 8, 32>}]} {
    %c0 = arith.constant 0 : index
    %c0_0 = arith.constant 0 : index
    %c0_1 = arith.constant 0 : index
    %0 = vector.load %arg1[%c0, %c0_0, %c0_1] : memref<8x8x32xf32, #tpu.memory_space<vmem>>, vector<8x8x32xf32>
    %1 = vector.shape_cast %0 : vector<8x8x32xf32> to vector<64x32xf32>
    %2 = arith.truncf %1 : vector<64x32xf32> to vector<64x32xbf16>
    %c0_2 = arith.constant 0 : index
    %c0_3 = arith.constant 0 : index
    %c0_4 = arith.constant 0 : index
    %3 = vector.load %arg2[%c0_2, %c0_3, %c0_4] : memref<8x8x16xf32, #tpu.memory_space<vmem>>, vector<8x8x16xf32>
    %4 = vector.shape_cast %3 : vector<8x8x16xf32> to vector<64x16xf32>
    %5 = arith.truncf %4 : vector<64x16xf32> to vector<64x16xbf16>
    %c0_5 = arith.constant 0 : index
    %c0_6 = arith.constant 0 : index
    %6 = vector.load %arg3[%c0_5, %c0_6] : memref<32x128xbf16, #tpu.memory_space<vmem>>, vector<32x128xbf16>
    %cst = arith.constant dense<0.000000e+00> : vector<64x128xf32>
    %7 = tpu.matmul %2, %6, %cst {dimension_numbers = #tpu.dot_dimension_numbers<[1], [0], [0], [1], [0, 0, 1, 1], [], []>} : vector<64x32xbf16>, vector<32x128xbf16>, vector<64x128xf32> -> vector<64x128xf32>
    %c0_7 = arith.constant 0 : index
    %c0_8 = arith.constant 0 : index
    %8 = vector.load %arg4[%c0_7, %c0_8] : memref<1x128xf32, #tpu.memory_space<vmem>>, vector<1x128xf32>
    %9 = vector.broadcast %8 : vector<1x128xf32> to vector<64x128xf32>
    %10 = arith.addf %7, %9 : vector<64x128xf32>
    %c0_9 = arith.constant 0 : index
    %c0_10 = arith.constant 0 : index
    %11 = vector.load %arg5[%c0_9, %c0_10] : memref<16x256xbf16, #tpu.memory_space<vmem>>, vector<16x256xbf16>
    %cst_11 = arith.constant dense<0.000000e+00> : vector<64x256xf32>
    %12 = tpu.matmul %5, %11, %cst_11 {dimension_numbers = #tpu.dot_dimension_numbers<[1], [0], [0], [1], [0, 0, 1, 1], [], []>} : vector<64x16xbf16>, vector<16x256xbf16>, vector<64x256xf32> -> vector<64x256xf32>
    %c0_12 = arith.constant 0 : index
    %c0_13 = arith.constant 0 : index
    %13 = vector.load %arg6[%c0_12, %c0_13] : memref<1x256xf32, #tpu.memory_space<vmem>>, vector<1x256xf32>
    %14 = vector.broadcast %13 : vector<1x256xf32> to vector<64x256xf32>
    %15 = arith.addf %12, %14 : vector<64x256xf32>
    %16 = vector.extract_strided_slice %15 {offsets = [0, 0], sizes = [64, 128], strides = [1, 1]} : vector<64x256xf32> to vector<64x128xf32>
    %17 = vector.extract_strided_slice %15 {offsets = [0, 128], sizes = [64, 128], strides = [1, 1]} : vector<64x256xf32> to vector<64x128xf32>
    %18 = vector.shape_cast %10 : vector<64x128xf32> to vector<8x8x128xf32>
    %19 = vector.shape_cast %16 : vector<64x128xf32> to vector<8x8x128xf32>
    %20 = vector.shape_cast %17 : vector<64x128xf32> to vector<8x8x128xf32>
    "tpu.trace_start"() <{level = 10 : i32, message = "bqe,bke->bqk"}> : () -> ()
    %cst_14 = arith.constant dense<0.000000e+00> : vector<8x8x8xf32>
    %21 = tpu.matmul %18, %19, %cst_14 {dimension_numbers = #tpu.dot_dimension_numbers<[2], [2], [1], [1], [0, 0, 0, 1, 1, 1], [0], [0]>} : vector<8x8x128xf32>, vector<8x8x128xf32>, vector<8x8x8xf32> -> vector<8x8x8xf32>
    "tpu.trace_stop"() : () -> ()
    %cst_15 = arith.constant dense<0xFF800000> : vector<8x8xf32>
    %22 = vector.multi_reduction <maximumf>, %21, %cst_15 [2] : vector<8x8x8xf32> to vector<8x8xf32>
    %23 = vector.shape_cast %22 : vector<8x8xf32> to vector<8x8x1xf32>
    %24 = vector.broadcast %23 : vector<8x8x1xf32> to vector<8x8x8xf32>
    %25 = arith.subf %21, %24 : vector<8x8x8xf32>
    %26 = math.exp %25 : vector<8x8x8xf32>
    %cst_16 = arith.constant dense<0.000000e+00> : vector<8x8xf32>
    %27 = vector.multi_reduction <add>, %26, %cst_16 [2] : vector<8x8x8xf32> to vector<8x8xf32>
    %28 = vector.shape_cast %27 : vector<8x8xf32> to vector<8x8x1xf32>
    %29 = tpu.reciprocal %28 {approx = true} : vector<8x8x1xf32> -> vector<8x8x1xf32>
    %30 = vector.broadcast %29 : vector<8x8x1xf32> to vector<8x8x8xf32>
    %31 = arith.mulf %26, %30 : vector<8x8x8xf32>
    "tpu.trace_start"() <{level = 10 : i32, message = "bqk,bke->bqe"}> : () -> ()
    %cst_17 = arith.constant dense<0.000000e+00> : vector<8x8x128xf32>
    %32 = tpu.matmul %31, %20, %cst_17 {dimension_numbers = #tpu.dot_dimension_numbers<[2], [1], [1], [2], [0, 0, 0, 1, 1, 2], [0], [0]>} : vector<8x8x8xf32>, vector<8x8x128xf32>, vector<8x8x128xf32> -> vector<8x8x128xf32>
    "tpu.trace_stop"() : () -> ()
    %33 = arith.addf %32, %18 : vector<8x8x128xf32>
    %34 = vector.shape_cast %33 : vector<8x8x128xf32> to vector<64x128xf32>
    %35 = arith.truncf %34 : vector<64x128xf32> to vector<64x128xbf16>
    %c0_18 = arith.constant 0 : index
    %c0_19 = arith.constant 0 : index
    %36 = vector.load %arg7[%c0_18, %c0_19] : memref<128x32xbf16, #tpu.memory_space<vmem>>, vector<128x32xbf16>
    %cst_20 = arith.constant dense<0.000000e+00> : vector<64x32xf32>
    %37 = tpu.matmul %35, %36, %cst_20 {dimension_numbers = #tpu.dot_dimension_numbers<[1], [0], [0], [1], [0, 0, 1, 1], [], []>} : vector<64x128xbf16>, vector<128x32xbf16>, vector<64x32xf32> -> vector<64x32xf32>
    %c0_21 = arith.constant 0 : index
    %c0_22 = arith.constant 0 : index
    %38 = vector.load %arg8[%c0_21, %c0_22] : memref<1x32xf32, #tpu.memory_space<vmem>>, vector<1x32xf32>
    %39 = vector.broadcast %38 : vector<1x32xf32> to vector<64x32xf32>
    %40 = arith.addf %37, %39 : vector<64x32xf32>
    %41 = vector.shape_cast %40 : vector<64x32xf32> to vector<8x8x32xf32>
    %c0_23 = arith.constant 0 : index
    %c0_24 = arith.constant 0 : index
    %c0_25 = arith.constant 0 : index
    %42 = vector.load %arg9[%c0_23, %c0_24, %c0_25] : memref<8x8x32xf32, #tpu.memory_space<vmem>>, vector<8x8x32xf32>
    tpu.vector_store %arg9[%c0_23, %c0_24, %c0_25], %41 {strides = array<i32>} : memref<8x8x32xf32, #tpu.memory_space<vmem>>, vector<8x8x32xf32>,
    return
  }
  func.func @transform_0(%arg0: i32) -> (i32, i32, i32) {
    %c0_i32 = arith.constant 0 : i32
    %c0_i32_0 = arith.constant 0 : i32
    %c0_i32_1 = arith.constant 0 : i32
    return %arg0, %c0_i32, %c0_i32_0 : i32, i32, i32
  }
  func.func @transform_1(%arg0: i32) -> (i32, i32, i32) {
    %c0_i32 = arith.constant 0 : i32
    %c0_i32_0 = arith.constant 0 : i32
    %c0_i32_1 = arith.constant 0 : i32
    return %arg0, %c0_i32, %c0_i32_0 : i32, i32, i32
  }
  func.func @transform_2(%arg0: i32) -> (i32, i32) {
    %c0_i32 = arith.constant 0 : i32
    %c0_i32_0 = arith.constant 0 : i32
    %c0_i32_1 = arith.constant 0 : i32
    return %c0_i32, %c0_i32_0 : i32, i32
  }
  func.func @transform_3(%arg0: i32) -> (i32, i32) {
    %c0_i32 = arith.constant 0 : i32
    %c0_i32_0 = arith.constant 0 : i32
    %c0_i32_1 = arith.constant 0 : i32
    return %c0_i32, %c0_i32_0 : i32, i32
  }
  func.func @transform_4(%arg0: i32) -> (i32, i32) {
    %c0_i32 = arith.constant 0 : i32
    %c0_i32_0 = arith.constant 0 : i32
    %c0_i32_1 = arith.constant 0 : i32
    return %c0_i32, %c0_i32_0 : i32, i32
  }
  func.func @transform_5(%arg0: i32) -> (i32, i32) {
    %c0_i32 = arith.constant 0 : i32
    %c0_i32_0 = arith.constant 0 : i32
    %c0_i32_1 = arith.constant 0 : i32
    return %c0_i32, %c0_i32_0 : i32, i32
  }
  func.func @transform_6(%arg0: i32) -> (i32, i32) {
    %c0_i32 = arith.constant 0 : i32
    %c0_i32_0 = arith.constant 0 : i32
    %c0_i32_1 = arith.constant 0 : i32
    return %c0_i32, %c0_i32_0 : i32, i32
  }
  func.func @transform_7(%arg0: i32) -> (i32, i32) {
    %c0_i32 = arith.constant 0 : i32
    %c0_i32_0 = arith.constant 0 : i32
    %c0_i32_1 = arith.constant 0 : i32
    return %c0_i32, %c0_i32_0 : i32, i32
  }
  func.func @transform_8(%arg0: i32) -> (i32, i32, i32) {
    %c0_i32 = arith.constant 0 : i32
    %c0_i32_0 = arith.constant 0 : i32
    %c0_i32_1 = arith.constant 0 : i32
    return %arg0, %c0_i32, %c0_i32_0 : i32, i32, i32
  }
}

module attributes {stable_mosaic.version = 11 : i64} {
  func.func @attention_kernel(%arg0: i32, %arg1: memref<8x8x32xf32, #tpu.memory_space<vmem>>, %arg2: memref<8x8x16xf32, #tpu.memory_space<vmem>>, %arg3: memref<32x128xbf16, #tpu.memory_space<vmem>>, %arg4: memref<1x128xf32, #tpu.memory_space<vmem>>, %arg5: memref<16x256xbf16, #tpu.memory_space<vmem>>, %arg6: memref<1x256xf32, #tpu.memory_space<vmem>>, %arg7: memref<128x32xbf16, #tpu.memory_space<vmem>>, %arg8: memref<1x32xf32, #tpu.memory_space<vmem>>, %arg9: memref<8x8x32xf32, #tpu.memory_space<vmem>>) attributes {dimension_semantics = [#tpu.dimension_semantics<parallel>], iteration_bounds = array<i64: 1>, scalar_prefetch = 0 : i64, scratch_operands = 0 : i64, tpu.core_type = #tpu.core_type<tc>, window_params = [{transform_indices = @transform_0, window_bounds = array<i64: 8, 8, 32>}, {transform_indices = @transform_1, window_bounds = array<i64: 8, 8, 16>}, {pipeline_mode = #tpu.pipeline_mode<synchronous>, transform_indices = @transform_2, window_bounds = array<i64: 32, 128>}, {pipeline_mode = #tpu.pipeline_mode<synchronous>, transform_indices = @transform_3, window_bounds = array<i64: 1, 128>}, {pipeline_mode = #tpu.pipeline_mode<synchronous>, transform_indices = @transform_4, window_bounds = array<i64: 16, 256>}, {pipeline_mode = #tpu.pipeline_mode<synchronous>, transform_indices = @transform_5, window_bounds = array<i64: 1, 256>}, {pipeline_mode = #tpu.pipeline_mode<synchronous>, transform_indices = @transform_6, window_bounds = array<i64: 128, 32>}, {pipeline_mode = #tpu.pipeline_mode<synchronous>, transform_indices = @transform_7, window_bounds = array<i64: 1, 32>}, {transform_indices = @transform_8, window_bounds = array<i64: 8, 8, 32>}]} {
    %c0 = arith.constant 0 : index
    %c0_0 = arith.constant 0 : index
    %c0_1 = arith.constant 0 : index
    %0 = vector.load %arg1[%c0, %c0_0, %c0_1] : memref<8x8x32xf32, #tpu.memory_space<vmem>>, vector<8x8x32xf32>
    %1 = vector.shape_cast %0 : vector<8x8x32xf32> to vector<64x32xf32>
    %2 = arith.truncf %1 : vector<64x32xf32> to vector<64x32xbf16>
    %c0_2 = arith.constant 0 : index
    %c0_3 = arith.constant 0 : index
    %c0_4 = arith.constant 0 : index
    %3 = vector.load %arg2[%c0_2, %c0_3, %c0_4] : memref<8x8x16xf32, #tpu.memory_space<vmem>>, vector<8x8x16xf32>
    %4 = vector.shape_cast %3 : vector<8x8x16xf32> to vector<64x16xf32>
    %5 = arith.truncf %4 : vector<64x16xf32> to vector<64x16xbf16>
    %c0_5 = arith.constant 0 : index
    %c0_6 = arith.constant 0 : index
    %6 = vector.load %arg3[%c0_5, %c0_6] : memref<32x128xbf16, #tpu.memory_space<vmem>>, vector<32x128xbf16>
    %cst = arith.constant dense<0.000000e+00> : vector<64x128xf32>
    %7 = tpu.matmul %2, %6, %cst {dimension_numbers = #tpu.dot_dimension_numbers<[1], [0], [0], [1], [0, 0, 1, 1], [], []>} : vector<64x32xbf16>, vector<32x128xbf16>, vector<64x128xf32> -> vector<64x128xf32>
    %c0_7 = arith.constant 0 : index
    %c0_8 = arith.constant 0 : index
    %8 = vector.load %arg4[%c0_7, %c0_8] : memref<1x128xf32, #tpu.memory_space<vmem>>, vector<1x128xf32>
    %9 = vector.broadcast %8 : vector<1x128xf32> to vector<64x128xf32>
    %10 = arith.addf %7, %9 : vector<64x128xf32>
    %c0_9 = arith.constant 0 : index
    %c0_10 = arith.constant 0 : index
    %11 = vector.load %arg5[%c0_9, %c0_10] : memref<16x256xbf16, #tpu.memory_space<vmem>>, vector<16x256xbf16>
    %cst_11 = arith.constant dense<0.000000e+00> : vector<64x256xf32>
    %12 = tpu.matmul %5, %11, %cst_11 {dimension_numbers = #tpu.dot_dimension_numbers<[1], [0], [0], [1], [0, 0, 1, 1], [], []>} : vector<64x16xbf16>, vector<16x256xbf16>, vector<64x256xf32> -> vector<64x256xf32>
    %c0_12 = arith.constant 0 : index
    %c0_13 = arith.constant 0 : index
    %13 = vector.load %arg6[%c0_12, %c0_13] : memref<1x256xf32, #tpu.memory_space<vmem>>, vector<1x256xf32>
    %14 = vector.broadcast %13 : vector<1x256xf32> to vector<64x256xf32>
    %15 = arith.addf %12, %14 : vector<64x256xf32>
    %16 = vector.extract_strided_slice %15 {offsets = [0, 0], sizes = [64, 128], strides = [1, 1]} : vector<64x256xf32> to vector<64x128xf32>
    %17 = vector.extract_strided_slice %15 {offsets = [0, 128], sizes = [64, 128], strides = [1, 1]} : vector<64x256xf32> to vector<64x128xf32>
    %18 = vector.shape_cast %10 : vector<64x128xf32> to vector<8x8x128xf32>
    %19 = vector.shape_cast %16 : vector<64x128xf32> to vector<8x8x128xf32>
    %20 = vector.shape_cast %17 : vector<64x128xf32> to vector<8x8x128xf32>
    "tpu.trace_start"() <{level = 10 : i32, message = "bqe,bke->bqk"}> : () -> ()
    %cst_14 = arith.constant dense<0.000000e+00> : vector<8x8x8xf32>
    %21 = tpu.matmul %18, %19, %cst_14 {dimension_numbers = #tpu.dot_dimension_numbers<[2], [2], [1], [1], [0, 0, 0, 1, 1, 1], [0], [0]>} : vector<8x8x128xf32>, vector<8x8x128xf32>, vector<8x8x8xf32> -> vector<8x8x8xf32>
    "tpu.trace_stop"() : () -> ()
    %cst_15 = arith.constant dense<0xFF800000> : vector<8x8xf32>
    %22 = vector.multi_reduction <maximumf>, %21, %cst_15 [2] : vector<8x8x8xf32> to vector<8x8xf32>
    %23 = vector.shape_cast %22 : vector<8x8xf32> to vector<8x8x1xf32>
    %24 = vector.broadcast %23 : vector<8x8x1xf32> to vector<8x8x8xf32>
    %25 = arith.subf %21, %24 : vector<8x8x8xf32>
    %26 = math.exp %25 : vector<8x8x8xf32>
    %cst_16 = arith.constant dense<0.000000e+00> : vector<8x8xf32>
    %27 = vector.multi_reduction <add>, %26, %cst_16 [2] : vector<8x8x8xf32> to vector<8x8xf32>
    %28 = vector.shape_cast %27 : vector<8x8xf32> to vector<8x8x1xf32>
    %29 = tpu.reciprocal %28 {approx = true} : vector<8x8x1xf32> -> vector<8x8x1xf32>
    %30 = vector.broadcast %29 : vector<8x8x1xf32> to vector<8x8x8xf32>
    %31 = arith.mulf %26, %30 : vector<8x8x8xf32>
    "tpu.trace_start"() <{level = 10 : i32, message = "bqk,bke->bqe"}> : () -> ()
    %cst_17 = arith.constant dense<0.000000e+00> : vector<8x8x128xf32>
    %32 = tpu.matmul %31, %20, %cst_17 {dimension_numbers = #tpu.dot_dimension_numbers<[2], [1], [1], [2], [0, 0, 0, 1, 1, 2], [0], [0]>} : vector<8x8x8xf32>, vector<8x8x128xf32>, vector<8x8x128xf32> -> vector<8x8x128xf32>
    "tpu.trace_stop"() : () -> ()
    %33 = arith.addf %32, %18 : vector<8x8x128xf32>
    %34 = vector.shape_cast %33 : vector<8x8x128xf32> to vector<64x128xf32>
    %35 = arith.truncf %34 : vector<64x128xf32> to vector<64x128xbf16>
    %c0_18 = arith.constant 0 : index
    %c0_19 = arith.constant 0 : index
    %36 = vector.load %arg7[%c0_18, %c0_19] : memref<128x32xbf16, #tpu.memory_space<vmem>>, vector<128x32xbf16>
    %cst_20 = arith.constant dense<0.000000e+00> : vector<64x32xf32>
    %37 = tpu.matmul %35, %36, %cst_20 {dimension_numbers = #tpu.dot_dimension_numbers<[1], [0], [0], [1], [0, 0, 1, 1], [], []>} : vector<64x128xbf16>, vector<128x32xbf16>, vector<64x32xf32> -> vector<64x32xf32>
    %c0_21 = arith.constant 0 : index
    %c0_22 = arith.constant 0 : index
    %38 = vector.load %arg8[%c0_21, %c0_22] : memref<1x32xf32, #tpu.memory_space<vmem>>, vector<1x32xf32>
    %39 = vector.broadcast %38 : vector<1x32xf32> to vector<64x32xf32>
    %40 = arith.addf %37, %39 : vector<64x32xf32>
    %41 = vector.shape_cast %40 : vector<64x32xf32> to vector<8x8x32xf32>
    %c0_23 = arith.constant 0 : index
    %c0_24 = arith.constant 0 : index
    %c0_25 = arith.constant 0 : index
    %42 = vector.load %arg9[%c0_23, %c0_24, %c0_25] : memref<8x8x32xf32, #tpu.memory_space<vmem>>, vector<8x8x32xf32>
    tpu.vector_store %arg9[%c0_23, %c0_24, %c0_25], %41 {strides = array<i32>} : memref<8x8x32xf32, #tpu.memory_space<vmem>>, vector<8x8x32xf32>,
    return
  }
  func.func @transform_0(%arg0: i32) -> (i32, i32, i32) {
    %c0_i32 = arith.constant 0 : i32
    %c0_i32_0 = arith.constant 0 : i32
    %c0_i32_1 = arith.constant 0 : i32
    return %arg0, %c0_i32, %c0_i32_0 : i32, i32, i32
  }
  func.func @transform_1(%arg0: i32) -> (i32, i32, i32) {
    %c0_i32 = arith.constant 0 : i32
    %c0_i32_0 = arith.constant 0 : i32
    %c0_i32_1 = arith.constant 0 : i32
    return %arg0, %c0_i32, %c0_i32_0 : i32, i32, i32
  }
  func.func @transform_2(%arg0: i32) -> (i32, i32) {
    %c0_i32 = arith.constant 0 : i32
    %c0_i32_0 = arith.constant 0 : i32
    %c0_i32_1 = arith.constant 0 : i32
    return %c0_i32, %c0_i32_0 : i32, i32
  }
  func.func @transform_3(%arg0: i32) -> (i32, i32) {
    %c0_i32 = arith.constant 0 : i32
    %c0_i32_0 = arith.constant 0 : i32
    %c0_i32_1 = arith.constant 0 : i32
    return %c0_i32, %c0_i32_0 : i32, i32
  }
  func.func @transform_4(%arg0: i32) -> (i32, i32) {
    %c0_i32 = arith.constant 0 : i32
    %c0_i32_0 = arith.constant 0 : i32
    %c0_i32_1 = arith.constant 0 : i32
    return %c0_i32, %c0_i32_0 : i32, i32
  }
  func.func @transform_5(%arg0: i32) -> (i32, i32) {
    %c0_i32 = arith.constant 0 : i32
    %c0_i32_0 = arith.constant 0 : i32
    %c0_i32_1 = arith.constant 0 : i32
    return %c0_i32, %c0_i32_0 : i32, i32
  }
  func.func @transform_6(%arg0: i32) -> (i32, i32) {
    %c0_i32 = arith.constant 0 : i32
    %c0_i32_0 = arith.constant 0 : i32
    %c0_i32_1 = arith.constant 0 : i32
    return %c0_i32, %c0_i32_0 : i32, i32
  }
  func.func @transform_7(%arg0: i32) -> (i32, i32) {
    %c0_i32 = arith.constant 0 : i32
    %c0_i32_0 = arith.constant 0 : i32
    %c0_i32_1 = arith.constant 0 : i32
    return %c0_i32, %c0_i32_0 : i32, i32
  }
  func.func @transform_8(%arg0: i32) -> (i32, i32, i32) {
    %c0_i32 = arith.constant 0 : i32
    %c0_i32_0 = arith.constant 0 : i32
    %c0_i32_1 = arith.constant 0 : i32
    return %arg0, %c0_i32, %c0_i32_0 : i32, i32, i32
  }
}

</mosaic_0001>

<bundles_post_ra>
// kernel: tpu_custom_call.1
= control target key start
LH: loop header
LB: loop body
LE: loop exit
PB: predicated region body
PF: predicated region fallthrough
CT: control target
= control target key end

     0   :  { %13 = vsyncpa [#allocation3], 0  ;;  %s2328_s0 = inlined_call_operand.vmem [shape: f32[8,8,32], index: 0, kind: input, shape index: {}]   ;;  %s2329_s1 = inlined_call_operand.hbm [shape: f32[8,8,16], index: 1, kind: input, shape index: {}]   ;;  %s2330_s2 = inlined_call_operand.vmem [shape: bf16[32,128], index: 2, kind: input, shape index: {}]   ;;  %s2331_s3 = inlined_call_operand.vmem [shape: f32[1,128], index: 3, kind: input, shape index: {}]   ;;  %s2332_s4 = inlined_call_operand.hbm [shape: bf16[16,256], index: 4, kind: input, shape index: {}]   ;;  %s2333_s5 = inlined_call_operand.vmem [shape: f32[1,256], index: 5, kind: input, shape index: {}]   ;;  %s2334_s6 = inlined_call_operand.vmem [shape: bf16[128,32], index: 6, kind: input, shape index: {}]   ;;  %s2335_s7 = inlined_call_operand.vmem [shape: f32[1,32], index: 7, kind: input, shape index: {}]   ;;  %s2336_s8 = inlined_call_operand.hbm [shape: f32[8,8,32], index: 8, kind: output, shape index: {}]  }
   0x1   :  { %14 = vsyncpa [#allocation6], 0 }
   0x2   :  { %15 = vsyncpa [#allocation4], 0  ;;  %s2016_s27 = smov [#allocation2]   ;;  %s1944_s9 = scalar_lea.hbm %s2329_s1, 1024 }
   0x3   :  { %s23_s28 = sshll.u32 %s2016_s27, 4  ;;  %p1945_p0 = scmp.ne.s32.totalorder %s2329_s1, %s1944_s9  ;;  %s24_s28 = int_to_ptr.vmem [resolvable:$true] %s23_s28 }
   0x4   :  { %p1948_p1 = scmp.lt.u32.totalorder %s1944_s9, %s2329_s1 }
   0x6   :  { %p1950_p2 = pnand %p1948_p1, %p1945_p0 }
   0x8   :  { %1953 = shalt.err (!%p1950_p2)
}
   0x9   :  { %s1954_s14 = scalar_lea.vmem %s24_s28, 1024  ;;  %p1959_p4 = scmp.lt.s32.totalorder %s24_s28, %s24_s28 }
   0xa   :  { %p1955_p3 = scmp.ne.s32.totalorder %s24_s28, %s1954_s14  ;;  %p1960_p5 = scmp.lt.s32.totalorder %s1954_s14, %s1954_s14 }
   0xc   :  { %p1961_p6 = por %p1960_p5, %p1959_p4 }
   0xe   :  { %p1962_p7 = pnand %p1961_p6, %p1955_p3 }
  0x10   :  { %1965 = shalt.err (!%p1962_p7)
}
  0x11   :  { %s2017_s15 = smov 128   ;;  %s2018_s16 = smov 8  }
  0x12   :  { %29 = dma.hbm_to_vmem [thread:$0]  %s2329_s1, 1024, %s24_s28, [#allocation3], %s2017_s15, %s2017_s15, %s2018_s16  }
  0x13   :  { %s2019_s19 = smov [#allocation5]   ;;  %s1966_s23 = scalar_lea.hbm %s2332_s4, 256 }
  0x14   :  { %s39_s20 = sshll.u32 %s2019_s19, 4  ;;  %p1967_p8 = scmp.ne.s32.totalorder %s2332_s4, %s1966_s23  ;;  %s40_s20 = int_to_ptr.vmem [resolvable:$true] %s39_s20 }
  0x15   :  { %p1970_p9 = scmp.lt.u32.totalorder %s1966_s23, %s2332_s4 }
  0x17   :  { %p1972_p10 = pnand %p1970_p9, %p1967_p8 }
  0x19   :  { %1975 = shalt.err (!%p1972_p10)
}
  0x1a   :  { %s1976_s29 = scalar_lea.vmem %s40_s20, 256  ;;  %p1981_p12 = scmp.lt.s32.totalorder %s40_s20, %s40_s20 }
  0x1b   :  { %p1977_p11 = scmp.ne.s32.totalorder %s40_s20, %s1976_s29  ;;  %p1982_p13 = scmp.lt.s32.totalorder %s1976_s29, %s1976_s29 }
  0x1d   :  { %p1983_p0 = por %p1982_p13, %p1981_p12 }
  0x1f   :  { %p1984_p1 = pnand %p1983_p0, %p1977_p11 }
  0x21   :  { %1987 = shalt.err (!%p1984_p1)
}
  0x22   :  { %45 = dma.hbm_to_vmem [thread:$0]  %s2332_s4, 256, %s40_s20, [#allocation6], %s2017_s15, %s2017_s15, %s2018_s16  }
  0x23   :  { %2010 = dma.done.wait [#allocation3], 1024  }
  0x24   :  { %2011 = vsyncadd [#allocation3], 4294966272 }
  0x25   :  { %2012 = dma.done.wait [#allocation6], 256  }
  0x26   :  { %2013 = vsyncadd [#allocation6], 4294967040  ;;  %v2020_v0 = vmov 0   ;;  %v1899_v1 = vld [vmem:[%s2330_s2] sm:$0xff]   ;;  %v1900_v2 = vld [vmem:[%s2330_s2 + $0x8] sm:$0xff]   ;;  %vm106_vm0 = vcmask 261120   ;;  %v188_v30 = vlaneseq }
  0x27   :  { %283 = vmatprep.mubr.bf16.mxu1 %v2020_v0  ;;  %1773 = vmatprep.subr.bf16.mxu0 %v1899_v1  ;;  %v59_v3 = vld [vmem:[%s2328_s0] sm:$0xff]  ;;  %v60_v4 = vld [vmem:[%s2328_s0 + $0x8] sm:$0xff]  ;;  %v61_v6 = vld [vmem:[%s2328_s0 + $0x10] sm:$0xff]  ;;  %vm208_vm1 = vcmask 130048   ;;  %v2021_v29 = vmov 0.0   ;;  %vm2022_vm2 = vmmov 0  }
  0x28   :  { %1774 = vmatpush3.bf16.msra.mxu0 %v1899_v1  ;;  %v67_v5 = vpack.c.bf16 %v60_v4, %v59_v3  ;;  %v62_v7 = vld [vmem:[%s2328_s0 + $0x18] sm:$0xff]  ;;  %v63_v8 = vld [vmem:[%s2328_s0 + $0x20] sm:$0xff]  ;;  %v64_v9 = vld [vmem:[%s2328_s0 + $0x28] sm:$0xff]  ;;  %v189_v31 = vshrl.u32 %v188_v30, 7  ;;  %vm854_vm3 = vcmask 64512  }
  0x29   :  { %1775 = vmatprep.subr.bf16.mxu0 %v1900_v2  ;;  %v1903_v10 = vld [vmem:[#allocation5 + $0x4] ss:$8 sps:$4 sm:$0xff]   ;;  %v68_v11 = vpack.c.bf16 %v62_v7, %v61_v6  ;;  %v1901_v12 = vld [vmem:[#allocation5] ss:$8 sps:$4 sm:$0xff]   ;;  %v69_v13 = vpack.c.bf16 %v64_v9, %v63_v8  ;;  %v77_v14 = vld [vmem:[#allocation2 + $0x30] sm:$0xff] }
  0x2a   :  { %1777 = vmatprep.mubr.msk.bf16.mxu0 %vm106_vm0, %v67_v5  ;;  %1889 = vmatprep.subr.bf16.mxu1 %v1903_v10  ;;  %v78_v15 = vld [vmem:[#allocation2 + $0x38] sm:$0xff]  ;;  %v65_v16 = vld [vmem:[%s2328_s0 + $0x30] sm:$0xff]  ;;  %v71_v20 = vld [vmem:[#allocation2] sm:$0xff]  ;;  %v194_v32 = vsub.s32 1, %v189_v31  ;;  %v190_v47 = vsub.s32 0, %v189_v31 }
  0x2b   :  { %1890 = vmatpush1.bf16.msra.mxu1 %v1901_v12  ;;  %v66_v17 = vld [vmem:[%s2328_s0 + $0x38] sm:$0xff]  ;;  %v82_v18 = vpack.c.bf16 %v78_v15, %v77_v14  ;;  %v72_v21 = vld [vmem:[#allocation2 + $0x8] sm:$0xff]  ;;  %v73_v23 = vld [vmem:[#allocation2 + $0x10] sm:$0xff] }
  0x2c   :  { %1776 = vmatpush3.bf16.msra.mxu0 %v1900_v2  ;;  %v70_v19 = vpack.c.bf16 %v66_v17, %v65_v16  ;;  %v79_v22 = vpack.c.bf16 %v72_v21, %v71_v20  ;;  %v74_v24 = vld [vmem:[#allocation2 + $0x18] sm:$0xff]  ;;  %v75_v26 = vld [vmem:[#allocation2 + $0x20] sm:$0xff]  ;;  %v76_v27 = vld [vmem:[#allocation2 + $0x28] sm:$0xff]  ;;  %1785 = vmatprep.subr.mxu1 %v2021_v29 }
  0x2d   :  { %221 = vmatprep.subr.bf16.mxu0 %v1903_v10  ;;  %v80_v25 = vpack.c.bf16 %v74_v24, %v73_v23  ;;  %v81_v28 = vpack.c.bf16 %v76_v27, %v75_v26  ;;  %v186_v33 = vld [vmem:[%s2333_s5] sm:$0x3] }
  0x2e   :  { %1705 = vmatmul.mubr.msk.bf16.vlgmr.msra.gmra.mrb[0].mxu1 %vm208_vm1, %v82_v18  ;;  %v2146_v37 = vrot.slane %v186_v33, %v194_v32  ;;  %v191_v50 = vrot.slane %v186_v33, %v190_v47  ;;  %v1693_v52 = vld [vmem:[%s2331_s3] ss:$0 sm:$0xff] }
  0x2f   :  { %1778 = vmatmul.mubr.msk.bf16.vlgmr.msra.gmra.mrb[0].mxu0 %vm106_vm0, %v68_v11  ;;  %1787 = vmatprep.mubr.msk.f32.mxu1 %vm2022_vm2, %v2021_v29 }
  0x30   :  { %1781 = vmatprep.mubr.msk.bf16.mxu0 %vm106_vm0, %v69_v13  ;;  %222 = vmatpush1.bf16.msra.mxu0 %v1901_v12 }
  0x31   :  { %1790 = vmatprep.subr.mxu0 %v2021_v29 }
  0x37   :  { %1782 = vmatmul.mubr.msk.bf16.gmra.mrb[4].mxu0 %vm106_vm0, %v70_v19 }
  0x38   :  { %253 = vmatprep.mubr.bf16.mxu0 %v2020_v0 }
  0x3f   :  { %1702 = vmatmul.mubr.msk.bf16.vlgmr.msra.gmra.mrb[8].mxu0 %vm208_vm1, %v79_v22 }
  0x40   :  { %263 = vmatprep.mubr.bf16.mxu0 %v2020_v0 }
  0x47   :  { %1703 = vmatmul.mubr.msk.bf16.gmra.mrb[12].mxu0 %vm208_vm1, %v80_v25 }
  0x48   :  { %273 = vmatprep.mubr.bf16.mxu0 %v2020_v0 }
  0x4f   :  { %1704 = vmatmul.mubr.msk.bf16.gmra.mrb[16].mxu0 %vm208_vm1, %v81_v28 }
  0x50   :  { %1792 = vmatprep.mubr.msk.f32.mxu0 %vm2022_vm2, %v2021_v29 }
 0x101   :  { %v285_v38 = vpop.f32.mrb[0].mxu1 }
 0x102   :  { %v1779_v34 = vpop.f32.mrb[0].mxu0  ;;  %v287_v40 = vpop.f32.mrb[1].mxu1  ;;  %v286_v12 = vadd.f32 %v285_v38, %v191_v50 }
 0x103   :  { %v153_v35 = vpop.f32.mrb[1].mxu0  ;;  %v2149_v41 = vadd.f32 %v287_v40, %v2146_v37  ;;  %v289_v42 = vpop.f32.mrb[2].mxu1  ;;  %v2174_v2 = vadd.f32 %v1779_v34, %v1693_v52 }
 0x104   :  { %v1780_v36 = vpop.f32.mrb[2].mxu0  ;;  %v291_v43 = vpop.f32.mrb[3].mxu1  ;;  %v2159_v58 = vadd.f32 %v1693_v52, %v153_v35  ;;  %v290_v17 = vadd.f32 %v289_v42, %v191_v50 }
 0x105   :  { %v156_v39 = vpop.f32.mrb[3].mxu0  ;;  %v2152_v44 = vadd.f32 %v291_v43, %v2146_v37  ;;  %v2183_v5 = vadd.f32 %v1780_v36, %v1693_v52 }
 0x106   :  { %v2162_v59 = vadd.f32 %v1693_v52, %v156_v39 }
 0x10a   :  { %v1783_v45 = vpop.f32.mrb[4].mxu0 }
 0x10b   :  { %v169_v46 = vpop.f32.mrb[5].mxu0  ;;  %v2204_v18 = vadd.f32 %v1783_v45, %v1693_v52 }
 0x10c   :  { %v2154_v48 = vpop.f32.mrb[6].mxu0  ;;  %v2192_v14 = vadd.f32 %v1693_v52, %v169_v46 }
 0x10d   :  { %v172_v49 = vpop.f32.mrb[7].mxu0  ;;  %v2212_v20 = vadd.f32 %v2154_v48, %v1693_v52 }
 0x10e   :  { %v2198_v16 = vadd.f32 %v1693_v52, %v172_v49 }
 0x112   :  { %v255_v51 = vpop.f32.mrb[8].mxu0 }
 0x113   :  { %v256_v53 = vadd.f32 %v255_v51, %v191_v50  ;;  %v257_v54 = vpop.f32.mrb[9].mxu0 }
 0x114   :  { %v259_v55 = vpop.f32.mrb[10].mxu0  ;;  %v258_v19 = vadd.f32 %v257_v54, %v2146_v37 }
 0x115   :  { %v260_v56 = vadd.f32 %v259_v55, %v191_v50  ;;  %v261_v57 = vpop.f32.mrb[11].mxu0  ;;  %1786 = vmatpush3.xpose.msra.mxu1 %v256_v53 }
 0x116   :  { %1805 = vmatprep.subr.mxu1 %v2021_v29  ;;  %v262_v21 = vadd.f32 %v261_v57, %v2146_v37 }
 0x117   :  { %1791 = vmatpush3.xpose.msra.mxu0 %v260_v56 }
 0x118   :  { %1788 = vmatmul.mubr.f32.vlgmr.msra.gmra.mrb[4].mxu1 %v2159_v58  ;;  %1795 = vmatprep.subr.mxu0 %v2021_v29 }
 0x119   :  { %1807 = vmatprep.mubr.msk.f32.mxu1 %vm2022_vm2, %v2021_v29 }
 0x11a   :  { %v265_v60 = vpop.f32.mrb[12].mxu0  ;;  %1793 = vmatmul.mubr.f32.vlgmr.msra.gmra.mrb[20].mxu0 %v2162_v59 }
 0x11b   :  { %v266_v61 = vadd.f32 %v265_v60, %v191_v50  ;;  %v267_v62 = vpop.f32.mrb[13].mxu0  ;;  %1797 = vmatprep.mubr.msk.f32.mxu0 %vm2022_vm2, %v2021_v29 }
 0x11c   :  { %v2172_v63 = vadd.f32 %v267_v62, %v2146_v37  ;;  %v269_v0 = vpop.f32.mrb[14].mxu0 }
 0x11d   :  { %1796 = vmatpush3.xpose.msra.mxu0 %v266_v61  ;;  %v271_v1 = vpop.f32.mrb[15].mxu0  ;;  %v270_v4 = vadd.f32 %v269_v0, %v191_v50 }
 0x11e   :  { %1800 = vmatprep.subr.mxu0 %v2021_v29  ;;  %v2178_v3 = vadd.f32 %v271_v1, %v2146_v37 }
 0x120   :  { %1798 = vmatmul.mubr.f32.vlgmr.msra.gmra.mrb[22].mxu0 %v2174_v2 }
 0x121   :  { %1801 = vmatpush3.xpose.msra.mxu0 %v270_v4  ;;  %1802 = vmatprep.mubr.msk.f32.mxu0 %vm2022_vm2, %v2021_v29 }
 0x122   :  { %v275_v6 = vpop.f32.mrb[16].mxu0  ;;  %1810 = vmatprep.subr.mxu0 %v2021_v29 }
 0x123   :  { %v276_v7 = vadd.f32 %v275_v6, %v191_v50  ;;  %v277_v8 = vpop.f32.mrb[17].mxu0 }
 0x124   :  { %v2187_v9 = vadd.f32 %v277_v8, %v2146_v37  ;;  %v279_v10 = vpop.f32.mrb[18].mxu0  ;;  %1803 = vmatmul.mubr.f32.vlgmr.msra.gmra.mrb[24].mxu0 %v2183_v5 }
 0x125   :  { %v280_v11 = vadd.f32 %v279_v10, %v191_v50  ;;  %1806 = vmatpush3.xpose.msra.mxu1 %v276_v7  ;;  %1812 = vmatprep.mubr.msk.f32.mxu0 %vm2022_vm2, %v2021_v29  ;;  %v281_v13 = vpop.f32.mrb[19].mxu0 }
 0x126   :  { %1815 = vmatprep.subr.mxu1 %v2021_v29  ;;  %v2196_v15 = vadd.f32 %v281_v13, %v2146_v37 }
 0x127   :  { %1811 = vmatpush3.xpose.msra.mxu0 %v280_v11 }
 0x128   :  { %1808 = vmatmul.mubr.f32.vlgmr.msra.gmra.mrb[6].mxu1 %v2192_v14  ;;  %1820 = vmatprep.subr.mxu0 %v2021_v29 }
 0x129   :  { %1816 = vmatpush3.xpose.msra.mxu1 %v286_v12  ;;  %1817 = vmatprep.mubr.msk.f32.mxu1 %vm2022_vm2, %v2021_v29 }
 0x12a   :  { %1813 = vmatmul.mubr.f32.vlgmr.msra.gmra.mrb[26].mxu0 %v2198_v16  ;;  %1825 = vmatprep.subr.mxu1 %v2021_v29 }
 0x12b   :  { %1821 = vmatpush3.xpose.msra.mxu0 %v290_v17  ;;  %1822 = vmatprep.mubr.msk.f32.mxu0 %vm2022_vm2, %v2021_v29 }
 0x12c   :  { %1818 = vmatmul.mubr.f32.vlgmr.msra.gmra.mrb[8].mxu1 %v2204_v18  ;;  %1830 = vmatprep.subr.mxu0 %v2021_v29 }
 0x12d   :  { %1826 = vmatpush3.msra.mxu1 %v258_v19  ;;  %1827 = vmatprep.mubr.msk.f32.mxu1 %vm2022_vm2, %v2021_v29 }
 0x12e   :  { %1823 = vmatmul.mubr.f32.vlgmr.msra.gmra.mrb[28].mxu0 %v2212_v20  ;;  %1835 = vmatprep.subr.mxu1 %v2021_v29 }
 0x12f   :  { %1831 = vmatpush3.msra.mxu0 %v262_v21  ;;  %1832 = vmatprep.mubr.msk.f32.mxu0 %vm2022_vm2, %v2021_v29 }
 0x130   :  { %1840 = vmatprep.subr.mxu0 %v2021_v29 }
 0x1eb   :  { %v360_v22 = vpop.f32.mrb[4].mxu1 }
 0x1ec   :  { %v1789_v23 = vpop.f32.mrb[5].mxu1  ;;  %v855_v24 = vsel %vm854_vm3, %v360_v22, -inf }
 0x1ed   :  { %v430_v25 = vpop.f32.mrb[20].mxu0  ;;  %856 = vmax.xlane.f32.xlu0 %v855_v24 }
 0x1ee   :  { %v1794_v26 = vpop.f32.mrb[21].mxu0  ;;  %v858_v27 = vsel %vm854_vm3, %v430_v25, -inf }
 0x1f1   :  { %859 = vmax.xlane.f32.xlu0 %v858_v27 }
 0x1f3   :  { %v500_v28 = vpop.f32.mrb[22].mxu0 }
 0x1f4   :  { %v1799_v30 = vpop.f32.mrb[23].mxu0  ;;  %v861_v31 = vsel %vm854_vm3, %v500_v28, -inf }
 0x1f5   :  { %862 = vmax.xlane.f32.xlu1 %v861_v31 }
 0x1f7   :  { %v570_v32 = vpop.f32.mrb[24].mxu0 }
 0x1f8   :  { %v1804_v33 = vpop.f32.mrb[25].mxu0  ;;  %v864_v34 = vsel %vm854_vm3, %v570_v32, -inf }
 0x1f9   :  { %865 = vmax.xlane.f32.xlu1 %v864_v34 }
 0x1fb   :  { %v640_v35 = vpop.f32.mrb[6].mxu1 }
 0x1fc   :  { %v1809_v36 = vpop.f32.mrb[7].mxu1  ;;  %v867_v37 = vsel %vm854_vm3, %v640_v35, -inf }
 0x1fd   :  { %v710_v38 = vpop.f32.mrb[26].mxu0  ;;  %868 = vmax.xlane.f32.xlu0 %v867_v37 }
 0x1fe   :  { %v1814_v39 = vpop.f32.mrb[27].mxu0  ;;  %v870_v40 = vsel %vm854_vm3, %v710_v38, -inf }
 0x1ff   :  { %871 = vmax.xlane.f32.xlu1 %v870_v40  ;;  %v780_v42 = vpop.f32.mrb[8].mxu1 }
 0x200   :  { %v1819_v43 = vpop.f32.mrb[9].mxu1  ;;  %v873_v45 = vsel %vm854_vm3, %v780_v42, -inf }
 0x201   :  { %v850_v46 = vpop.f32.mrb[28].mxu0  ;;  %874 = vmax.xlane.f32.xlu0 %v873_v45 }
 0x202   :  { %v1824_v47 = vpop.f32.mrb[29].mxu0  ;;  %v876_v48 = vsel %vm854_vm3, %v850_v46, -inf }
 0x203   :  { %877 = vmax.xlane.f32.xlu1 %v876_v48 }
 0x27a   :  { %v857_v49 = vpop.xlane.xlu0 %856 }
 0x27b   :  { %v879_v50 = vsub.f32 %v360_v22, %v857_v49 }
 0x27d   :  { %v887_v51 = vmul.f32 1.442695, %v879_v50 }
 0x27e   :  { %v860_v52 = vpop.xlane.xlu0 %859 }
 0x27f   :  { %1912 = vpow2.f32 %v887_v51  ;;  %v880_v53 = vsub.f32 %v430_v25, %v860_v52 }
 0x281   :  { %v889_v54 = vmul.f32 1.442695, %v880_v53 }
 0x282   :  { %v863_v55 = vpop.xlane.xlu1 %862 }
 0x283   :  { %1914 = vpow2.f32 %v889_v54  ;;  %v881_v56 = vsub.f32 %v500_v28, %v863_v55 }
 0x285   :  { %v891_v57 = vmul.f32 1.442695, %v881_v56 }
 0x286   :  { %v866_v60 = vpop.xlane.xlu1 %865 }
 0x287   :  { %1916 = vpow2.f32 %v891_v57  ;;  %v882_v61 = vsub.f32 %v570_v32, %v866_v60 }
 0x289   :  { %v1913_v62 = vpop.eup %1912  ;;  %v893_v0 = vmul.f32 1.442695, %v882_v61  ;;  %v1905_v61 = vld [vmem:[%s2334_s6 + $0x8] sm:$0xff]  }
 0x28a   :  { %v869_v1 = vpop.xlane.xlu0 %868  ;;  %v903_v4 = vsel %vm854_vm3, %v1913_v62, 0.0 }
 0x28b   :  { %1918 = vpow2.f32 %v893_v0  ;;  %v883_v6 = vsub.f32 %v640_v35, %v869_v1  ;;  %904 = vadd.xlane.f32.xlu0 %v903_v4  ;;  %v1909_v1 = vld [vmem:[%s2334_s6 + $0x28] sm:$0xff]   ;;  %v1910_v4 = vld [vmem:[%s2334_s6 + $0x30] sm:$0xff]  }
 0x28c   :  { %v872_v7 = vpop.xlane.xlu1 %871 }
 0x28d   :  { %v1915_v8 = vpop.eup %1914  ;;  %v895_v10 = vmul.f32 1.442695, %v883_v6  ;;  %v884_v11 = vsub.f32 %v710_v38, %v872_v7  ;;  %v1911_v6 = vld [vmem:[%s2334_s6 + $0x38] sm:$0xff]  }
 0x28e   :  { %v875_v12 = vpop.xlane.xlu0 %874  ;;  %v906_v13 = vsel %vm854_vm3, %v1915_v8, 0.0 }
 0x28f   :  { %1920 = vpow2.f32 %v895_v10  ;;  %v897_v17 = vmul.f32 1.442695, %v884_v11  ;;  %v885_v19 = vsub.f32 %v780_v42, %v875_v12  ;;  %907 = vadd.xlane.f32.xlu1 %v906_v13 }
 0x290   :  { %v878_v21 = vpop.xlane.xlu1 %877 }
 0x291   :  { %v1917_v22 = vpop.eup %1916  ;;  %1922 = vpow2.f32 %v897_v17  ;;  %v899_v23 = vmul.f32 1.442695, %v885_v19  ;;  %v886_v24 = vsub.f32 %v850_v46, %v878_v21 }
 0x292   :  { %v909_v25 = vsel %vm854_vm3, %v1917_v22, 0.0 }
 0x293   :  { %1924 = vpow2.f32 %v899_v23  ;;  %v901_v26 = vmul.f32 1.442695, %v886_v24  ;;  %910 = vadd.xlane.f32.xlu0 %v909_v25 }
 0x295   :  { %v1919_v27 = vpop.eup %1918  ;;  %1926 = vpow2.f32 %v901_v26 }
 0x296   :  { %v912_v28 = vsel %vm854_vm3, %v1919_v27, 0.0 }
 0x297   :  { %913 = vadd.xlane.f32.xlu1 %v912_v28 }
 0x299   :  { %v1921_v30 = vpop.eup %1920 }
 0x29a   :  { %v915_v31 = vsel %vm854_vm3, %v1921_v30, 0.0 }
 0x29b   :  { %v1923_v32 = vpop.eup %1922  ;;  %916 = vadd.xlane.f32.xlu0 %v915_v31 }
 0x29c   :  { %v918_v33 = vsel %vm854_vm3, %v1923_v32, 0.0 }
 0x29d   :  { %v1925_v34 = vpop.eup %1924  ;;  %919 = vadd.xlane.f32.xlu1 %v918_v33 }
 0x29e   :  { %v921_v35 = vsel %vm854_vm3, %v1925_v34, 0.0 }
 0x29f   :  { %v1927_v36 = vpop.eup %1926  ;;  %922 = vadd.xlane.f32.xlu0 %v921_v35 }
 0x2a0   :  { %v924_v37 = vsel %vm854_vm3, %v1927_v36, 0.0 }
 0x2a1   :  { %925 = vadd.xlane.f32.xlu1 %v924_v37 }
 0x318   :  { %v905_v38 = vpop.xlane.xlu0 %904 }
 0x319   :  { %1928 = vrcp.f32 %v905_v38  ;;  %v1714_v38 = vld [vmem:[%s2335_s7] ss:$0 sm:$0xff]  ;;  %s2023_s7 = smov [#allocation7]  }
 0x31a   :  { %s1680_s23 = sshll.u32 %s2023_s7, 4  ;;  %s1681_s23 = int_to_ptr.vmem [resolvable:$true] %s1680_s23 }
 0x31b   :  { %s1988_s24 = scalar_lea.vmem %s1681_s23, 1024  ;;  %p1993_p3 = scmp.lt.s32.totalorder %s1681_s23, %s1681_s23 }
 0x31c   :  { %v908_v39 = vpop.xlane.xlu1 %907  ;;  %p1989_p2 = scmp.ne.s32.totalorder %s1681_s23, %s1988_s24  ;;  %p1994_p4 = scmp.lt.s32.totalorder %s1988_s24, %s1988_s24 }
 0x31d   :  { %1930 = vrcp.f32 %v908_v39 }
 0x31e   :  { %p1995_p5 = por %p1994_p4, %p1993_p3 }
 0x320   :  { %v911_v40 = vpop.xlane.xlu0 %910  ;;  %p1996_p6 = pnand %p1995_p5, %p1989_p2 }
 0x321   :  { %1932 = vrcp.f32 %v911_v40 }
 0x323   :  { %v1929_v42 = vpop.eup %1928 }
 0x324   :  { %v935_v43 = vmul.f32 %v1929_v42, %v1913_v62  ;;  %v914_v45 = vpop.xlane.xlu1 %913 }
 0x325   :  { %1934 = vrcp.f32 %v914_v45 }
 0x326   :  { %1828 = vmatmul.mubr.msk.f32.vlgmr.msra.gmra.mrb[10].mxu1 %vm854_vm3, %v935_v43 }
 0x327   :  { %v1931_v46 = vpop.eup %1930  ;;  %1836 = vmatpush3.msra.mxu1 %v2172_v63  ;;  %1837 = vmatprep.mubr.msk.f32.mxu1 %vm2022_vm2, %v2021_v29 }
 0x328   :  { %v936_v47 = vmul.f32 %v1931_v46, %v1915_v8  ;;  %v917_v48 = vpop.xlane.xlu0 %916  ;;  %1845 = vmatprep.subr.mxu1 %v2021_v29 }
 0x329   :  { %1936 = vrcp.f32 %v917_v48 }
 0x32a   :  { %1833 = vmatmul.mubr.msk.f32.vlgmr.msra.gmra.mrb[30].mxu0 %vm854_vm3, %v936_v47  ;;  %v920_v49 = vpop.xlane.xlu1 %919 }
 0x32b   :  { %v1933_v50 = vpop.eup %1932  ;;  %1841 = vmatpush3.msra.mxu0 %v2178_v3  ;;  %1938 = vrcp.f32 %v920_v49  ;;  %1842 = vmatprep.mubr.msk.f32.mxu0 %vm2022_vm2, %v2021_v29 }
 0x32c   :  { %v937_v51 = vmul.f32 %v1933_v50, %v1917_v22  ;;  %v923_v63 = vpop.xlane.xlu0 %922  ;;  %1850 = vmatprep.subr.mxu0 %v2021_v29 }
 0x32d   :  { %1940 = vrcp.f32 %v923_v63 }
 0x32e   :  { %v926_v52 = vpop.xlane.xlu1 %925  ;;  %1838 = vmatmul.mubr.msk.f32.vlgmr.msra.gmra.mrb[12].mxu1 %vm854_vm3, %v937_v51 }
 0x32f   :  { %v1935_v53 = vpop.eup %1934  ;;  %1942 = vrcp.f32 %v926_v52  ;;  %1846 = vmatpush3.msra.mxu1 %v2187_v9  ;;  %1847 = vmatprep.mubr.msk.f32.mxu1 %vm2022_vm2, %v2021_v29  ;;  %v1904_v9 = vld [vmem:[%s2334_s6] sm:$0xff]  }
 0x330   :  { %v938_v3 = vmul.f32 %v1935_v53, %v1919_v27  ;;  %1855 = vmatprep.subr.mxu1 %v2021_v29 }
 0x332   :  { %1843 = vmatmul.mubr.msk.f32.vlgmr.msra.gmra.mrb[32].mxu0 %vm854_vm3, %v938_v3 }
 0x333   :  { %v1937_v54 = vpop.eup %1936  ;;  %1851 = vmatpush3.msra.mxu0 %v2196_v15  ;;  %1852 = vmatprep.mubr.msk.f32.mxu0 %vm2022_vm2, %v2021_v29 }
 0x334   :  { %v939_v55 = vmul.f32 %v1937_v54, %v1921_v30  ;;  %1860 = vmatprep.subr.mxu0 %v2021_v29 }
 0x335   :  { %v1939_v56 = vpop.eup %1938 }
 0x336   :  { %v940_v57 = vmul.f32 %v1939_v56, %v1923_v32  ;;  %1848 = vmatmul.mubr.msk.f32.vlgmr.msra.gmra.mrb[14].mxu1 %vm854_vm3, %v939_v55 }
 0x337   :  { %v1941_v60 = vpop.eup %1940  ;;  %1856 = vmatpush3.msra.mxu1 %v2149_v41  ;;  %1857 = vmatprep.mubr.msk.f32.mxu1 %vm2022_vm2, %v2021_v29  ;;  %v1906_v41 = vld [vmem:[%s2334_s6 + $0x10] sm:$0xff]  }
 0x338   :  { %v941_v15 = vmul.f32 %v1941_v60, %v1925_v34  ;;  %1853 = vmatmul.mubr.msk.f32.vlgmr.msra.gmra.mrb[34].mxu0 %vm854_vm3, %v940_v57  ;;  %1865 = vmatprep.subr.bf16.mxu1 %v1904_v9 }
 0x339   :  { %v1943_v62 = vpop.eup %1942  ;;  %1861 = vmatpush3.msra.mxu0 %v2152_v44  ;;  %1862 = vmatprep.mubr.msk.f32.mxu0 %vm2022_vm2, %v2021_v29  ;;  %v1907_v44 = vld [vmem:[%s2334_s6 + $0x18] sm:$0xff]   ;;  %v1908_v29 = vld [vmem:[%s2334_s6 + $0x20] sm:$0xff]  }
 0x33a   :  { %v942_v0 = vmul.f32 %v1943_v62, %v1927_v36  ;;  %1858 = vmatmul.mubr.msk.f32.vlgmr.msra.gmra.mrb[16].mxu1 %vm854_vm3, %v941_v15 }
 0x33b   :  { %1866 = vmatpush3.bf16.msra.mxu1 %v1904_v9 }
 0x33c   :  { %1863 = vmatmul.mubr.msk.f32.vlgmr.msra.gmra.mrb[36].mxu0 %vm854_vm3, %v942_v0  ;;  %1867 = vmatprep.subr.bf16.mxu1 %v1905_v61 }
 0x33f   :  { %1868 = vmatpush3.bf16.msra.mxu1 %v1905_v61 }
 0x340   :  { %1869 = vmatprep.subr.bf16.mxu1 %v1906_v41 }
 0x343   :  { %1870 = vmatpush3.bf16.msra.mxu1 %v1906_v41 }
 0x344   :  { %1871 = vmatprep.subr.bf16.mxu1 %v1907_v44 }
 0x347   :  { %1872 = vmatpush3.bf16.msra.mxu1 %v1907_v44 }
 0x348   :  { %1873 = vmatprep.subr.bf16.mxu1 %v1908_v29 }
 0x34b   :  { %1874 = vmatpush3.bf16.msra.mxu1 %v1908_v29 }
 0x34c   :  { %1875 = vmatprep.subr.bf16.mxu1 %v1909_v1 }
 0x34f   :  { %1876 = vmatpush3.bf16.msra.mxu1 %v1909_v1 }
 0x350   :  { %1877 = vmatprep.subr.bf16.mxu1 %v1910_v4 }
 0x353   :  { %1878 = vmatpush3.bf16.msra.mxu1 %v1910_v4 }
 0x354   :  { %1879 = vmatprep.subr.bf16.mxu1 %v1911_v6 }
 0x357   :  { %1880 = vmatpush3.bf16.msra.mxu1 %v1911_v6 }
 0x3f9   :  { %v1012_v7 = vpop.f32.mrb[10].mxu1 }
 0x3fa   :  { %v1829_v8 = vpop.f32.mrb[11].mxu1  ;;  %v1013_v11 = vadd.f32 %v1012_v7, %v2159_v58 }
 0x3fd   :  { %v1085_v10 = vpop.f32.mrb[30].mxu0 }
 0x3fe   :  { %v1086_v12 = vadd.f32 %v1085_v10, %v2162_v59  ;;  %v1834_v13 = vpop.f32.mrb[31].mxu0 }
 0x400   :  { %v1527_v17 = vpack.c.bf16 %v1086_v12, %v1013_v11 }
 0x401   :  { %v1158_v19 = vpop.f32.mrb[12].mxu1 }
 0x402   :  { %v1839_v21 = vpop.f32.mrb[13].mxu1  ;;  %1881 = vmatprep.mubr.bf16.mxu1 %v1527_v17  ;;  %v1159_v23 = vadd.f32 %v1158_v19, %v2174_v2 }
 0x405   :  { %v1231_v22 = vpop.f32.mrb[32].mxu0 }
 0x406   :  { %v1232_v24 = vadd.f32 %v1231_v22, %v2183_v5  ;;  %v1844_v25 = vpop.f32.mrb[33].mxu0 }
 0x408   :  { %v1528_v26 = vpack.c.bf16 %v1232_v24, %v1159_v23 }
 0x409   :  { %v1304_v27 = vpop.f32.mrb[14].mxu1 }
 0x40a   :  { %v1849_v28 = vpop.f32.mrb[15].mxu1  ;;  %1882 = vmatmul.mubr.bf16.vlgmr.msra.gmra.mrb[20].mxu1 %v1528_v26  ;;  %v1305_v58 = vadd.f32 %v1304_v27, %v2192_v14 }
 0x40b   :  { %v1377_v30 = vpop.f32.mrb[34].mxu0 }
 0x40c   :  { %v1378_v59 = vadd.f32 %v1377_v30, %v2198_v16  ;;  %v1854_v31 = vpop.f32.mrb[35].mxu0 }
 0x40d   :  { %v1450_v32 = vpop.f32.mrb[16].mxu1 }
 0x40e   :  { %v1529_v33 = vpack.c.bf16 %v1378_v59, %v1305_v58  ;;  %v1859_v34 = vpop.f32.mrb[17].mxu1  ;;  %v1451_v36 = vadd.f32 %v1450_v32, %v2204_v18 }
 0x40f   :  { %v1523_v35 = vpop.f32.mrb[36].mxu0 }
 0x410   :  { %v1524_v2 = vadd.f32 %v1523_v35, %v2212_v20  ;;  %v1864_v5 = vpop.f32.mrb[37].mxu0  ;;  %1885 = vmatprep.mubr.bf16.mxu1 %v1529_v33 }
 0x412   :  { %v1530_v37 = vpack.c.bf16 %v1524_v2, %v1451_v36 }
 0x414   :  { %1886 = vmatmul.mubr.bf16.gmra.mrb[24].mxu1 %v1530_v37 }
 0x4dd   :  { %v1883_v14 = vpop.f32.mrb[20].mxu1 }
 0x4de   :  { %v1645_v39 = vadd.f32 %v1883_v14, %v1714_v38  ;;  %v1636_v16 = vpop.f32.mrb[21].mxu1 }
 0x4df   :  { %v1637_v40 = vadd.f32 %v1714_v38, %v1636_v16  ;;  %v1884_v42 = vpop.f32.mrb[22].mxu1 }
 0x4e0   :  { %1669 = vst.msk [vmem:[#allocation7 + $0x10] sm:$0xff] %vm106_vm0, %v1645_v39  ;;  %v1648_v43 = vadd.f32 %v1884_v42, %v1714_v38  ;;  %v1639_v45 = vpop.f32.mrb[23].mxu1 }
 0x4e1   :  { %1667 = vst.msk [vmem:[#allocation7] sm:$0xff] %vm106_vm0, %v1637_v40  ;;  %v1640_v18 = vadd.f32 %v1714_v38, %v1639_v45 }
 0x4e2   :  { %1670 = vst.msk [vmem:[#allocation7 + $0x18] sm:$0xff] %vm106_vm0, %v1648_v43 }
 0x4e3   :  { %1668 = vst.msk [vmem:[#allocation7 + $0x8] sm:$0xff] %vm106_vm0, %v1640_v18 }
 0x4e7   :  { %v1887_v20 = vpop.f32.mrb[24].mxu1 }
 0x4e8   :  { %v1661_v46 = vadd.f32 %v1887_v20, %v1714_v38  ;;  %v1652_v47 = vpop.f32.mrb[25].mxu1 }
 0x4e9   :  { %v1653_v48 = vadd.f32 %v1714_v38, %v1652_v47  ;;  %v1888_v49 = vpop.f32.mrb[26].mxu1 }
 0x4ea   :  { %1673 = vst.msk [vmem:[#allocation7 + $0x30] sm:$0xff] %vm106_vm0, %v1661_v46  ;;  %v1664_v50 = vadd.f32 %v1888_v49, %v1714_v38  ;;  %v1655_v51 = vpop.f32.mrb[27].mxu1 }
 0x4eb   :  { %1671 = vst.msk [vmem:[#allocation7 + $0x20] sm:$0xff] %vm106_vm0, %v1653_v48  ;;  %v1656_v63 = vadd.f32 %v1714_v38, %v1655_v51 }
 0x4ec   :  { %1674 = vst.msk [vmem:[#allocation7 + $0x38] sm:$0xff] %vm106_vm0, %v1664_v50 }
 0x4ed   :  { %1672 = vst.msk [vmem:[#allocation7 + $0x28] sm:$0xff] %vm106_vm0, %v1656_v63 }
 0x4ee   :  { %1999 = shalt.err (!%p1996_p6)
}
 0x4ef   :  { %s2000_s27 = scalar_lea.hbm %s2336_s8, 1024 }
 0x4f0   :  { %p2001_p7 = scmp.ne.s32.totalorder %s2336_s8, %s2000_s27  ;;  %p2004_p8 = scmp.lt.u32.totalorder %s2000_s27, %s2336_s8 }
 0x4f2   :  { %p2006_p9 = pnand %p2004_p8, %p2001_p7 }
 0x4f4   :  { %2009 = shalt.err (!%p2006_p9)
}
 0x4f5   :  { %1686 = dma.vmem_to_hbm [thread:$0]  %s1681_s23, 1024, %s2336_s8, [#allocation4], %s2017_s15, %s2017_s15, %s2018_s16  }
 0x4f6   :  { %2014 = dma.done.wait [#allocation4], 1024  }
 0x4f7   :  { %2015 = vsyncadd [#allocation4], 4294966272 }
 0x4f8   :  { %1690 = vsyncpa [#allocation3], 1 }
 0x4f9   :  { %1691 = vsyncpa [#allocation6], 1 }
 0x4fa   :  { %1692 = vsyncpa [#allocation4], 1 }

// kernel: tpu_custom_call.1
= control target key start
LH: loop header
LB: loop body
LE: loop exit
PB: predicated region body
PF: predicated region fallthrough
CT: control target
= control target key end

     0   :  { %13 = vsyncpa [#allocation3], 0  ;;  %s2328_s0 = inlined_call_operand.vmem [shape: f32[8,8,32], index: 0, kind: input, shape index: {}]   ;;  %s2329_s1 = inlined_call_operand.hbm [shape: f32[8,8,16], index: 1, kind: input, shape index: {}]   ;;  %s2330_s2 = inlined_call_operand.vmem [shape: bf16[32,128], index: 2, kind: input, shape index: {}]   ;;  %s2331_s3 = inlined_call_operand.vmem [shape: f32[1,128], index: 3, kind: input, shape index: {}]   ;;  %s2332_s4 = inlined_call_operand.hbm [shape: bf16[16,256], index: 4, kind: input, shape index: {}]   ;;  %s2333_s5 = inlined_call_operand.vmem [shape: f32[1,256], index: 5, kind: input, shape index: {}]   ;;  %s2334_s6 = inlined_call_operand.vmem [shape: bf16[128,32], index: 6, kind: input, shape index: {}]   ;;  %s2335_s7 = inlined_call_operand.vmem [shape: f32[1,32], index: 7, kind: input, shape index: {}]   ;;  %s2336_s8 = inlined_call_operand.hbm [shape: f32[8,8,32], index: 8, kind: output, shape index: {}]  }
   0x1   :  { %14 = vsyncpa [#allocation6], 0 }
   0x2   :  { %15 = vsyncpa [#allocation4], 0  ;;  %s2016_s27 = smov [#allocation2]   ;;  %s1944_s9 = scalar_lea.hbm %s2329_s1, 1024 }
   0x3   :  { %s23_s28 = sshll.u32 %s2016_s27, 4  ;;  %p1945_p0 = scmp.ne.s32.totalorder %s2329_s1, %s1944_s9  ;;  %s24_s28 = int_to_ptr.vmem [resolvable:$true] %s23_s28 }
   0x4   :  { %p1948_p1 = scmp.lt.u32.totalorder %s1944_s9, %s2329_s1 }
   0x6   :  { %p1950_p2 = pnand %p1948_p1, %p1945_p0 }
   0x8   :  { %1953 = shalt.err (!%p1950_p2)
}
   0x9   :  { %s1954_s14 = scalar_lea.vmem %s24_s28, 1024  ;;  %p1959_p4 = scmp.lt.s32.totalorder %s24_s28, %s24_s28 }
   0xa   :  { %p1955_p3 = scmp.ne.s32.totalorder %s24_s28, %s1954_s14  ;;  %p1960_p5 = scmp.lt.s32.totalorder %s1954_s14, %s1954_s14 }
   0xc   :  { %p1961_p6 = por %p1960_p5, %p1959_p4 }
   0xe   :  { %p1962_p7 = pnand %p1961_p6, %p1955_p3 }
  0x10   :  { %1965 = shalt.err (!%p1962_p7)
}
  0x11   :  { %s2017_s15 = smov 128   ;;  %s2018_s16 = smov 8  }
  0x12   :  { %29 = dma.hbm_to_vmem [thread:$0]  %s2329_s1, 1024, %s24_s28, [#allocation3], %s2017_s15, %s2017_s15, %s2018_s16  }
  0x13   :  { %s2019_s19 = smov [#allocation5]   ;;  %s1966_s23 = scalar_lea.hbm %s2332_s4, 256 }
  0x14   :  { %s39_s20 = sshll.u32 %s2019_s19, 4  ;;  %p1967_p8 = scmp.ne.s32.totalorder %s2332_s4, %s1966_s23  ;;  %s40_s20 = int_to_ptr.vmem [resolvable:$true] %s39_s20 }
  0x15   :  { %p1970_p9 = scmp.lt.u32.totalorder %s1966_s23, %s2332_s4 }
  0x17   :  { %p1972_p10 = pnand %p1970_p9, %p1967_p8 }
  0x19   :  { %1975 = shalt.err (!%p1972_p10)
}
  0x1a   :  { %s1976_s29 = scalar_lea.vmem %s40_s20, 256  ;;  %p1981_p12 = scmp.lt.s32.totalorder %s40_s20, %s40_s20 }
  0x1b   :  { %p1977_p11 = scmp.ne.s32.totalorder %s40_s20, %s1976_s29  ;;  %p1982_p13 = scmp.lt.s32.totalorder %s1976_s29, %s1976_s29 }
  0x1d   :  { %p1983_p0 = por %p1982_p13, %p1981_p12 }
  0x1f   :  { %p1984_p1 = pnand %p1983_p0, %p1977_p11 }
  0x21   :  { %1987 = shalt.err (!%p1984_p1)
}
  0x22   :  { %45 = dma.hbm_to_vmem [thread:$0]  %s2332_s4, 256, %s40_s20, [#allocation6], %s2017_s15, %s2017_s15, %s2018_s16  }
  0x23   :  { %2010 = dma.done.wait [#allocation3], 1024  }
  0x24   :  { %2011 = vsyncadd [#allocation3], 4294966272 }
  0x25   :  { %2012 = dma.done.wait [#allocation6], 256  }
  0x26   :  { %2013 = vsyncadd [#allocation6], 4294967040  ;;  %v2020_v0 = vmov 0   ;;  %v1899_v1 = vld [vmem:[%s2330_s2] sm:$0xff]   ;;  %v1900_v2 = vld [vmem:[%s2330_s2 + $0x8] sm:$0xff]   ;;  %vm106_vm0 = vcmask 261120   ;;  %v188_v30 = vlaneseq }
  0x27   :  { %283 = vmatprep.mubr.bf16.mxu1 %v2020_v0  ;;  %1773 = vmatprep.subr.bf16.mxu0 %v1899_v1  ;;  %v59_v3 = vld [vmem:[%s2328_s0] sm:$0xff]  ;;  %v60_v4 = vld [vmem:[%s2328_s0 + $0x8] sm:$0xff]  ;;  %v61_v6 = vld [vmem:[%s2328_s0 + $0x10] sm:$0xff]  ;;  %vm208_vm1 = vcmask 130048   ;;  %v2021_v29 = vmov 0.0   ;;  %vm2022_vm2 = vmmov 0  }
  0x28   :  { %1774 = vmatpush3.bf16.msra.mxu0 %v1899_v1  ;;  %v67_v5 = vpack.c.bf16 %v60_v4, %v59_v3  ;;  %v62_v7 = vld [vmem:[%s2328_s0 + $0x18] sm:$0xff]  ;;  %v63_v8 = vld [vmem:[%s2328_s0 + $0x20] sm:$0xff]  ;;  %v64_v9 = vld [vmem:[%s2328_s0 + $0x28] sm:$0xff]  ;;  %v189_v31 = vshrl.u32 %v188_v30, 7  ;;  %vm854_vm3 = vcmask 64512  }
  0x29   :  { %1775 = vmatprep.subr.bf16.mxu0 %v1900_v2  ;;  %v1903_v10 = vld [vmem:[#allocation5 + $0x4] ss:$8 sps:$4 sm:$0xff]   ;;  %v68_v11 = vpack.c.bf16 %v62_v7, %v61_v6  ;;  %v1901_v12 = vld [vmem:[#allocation5] ss:$8 sps:$4 sm:$0xff]   ;;  %v69_v13 = vpack.c.bf16 %v64_v9, %v63_v8  ;;  %v77_v14 = vld [vmem:[#allocation2 + $0x30] sm:$0xff] }
  0x2a   :  { %1777 = vmatprep.mubr.msk.bf16.mxu0 %vm106_vm0, %v67_v5  ;;  %1889 = vmatprep.subr.bf16.mxu1 %v1903_v10  ;;  %v78_v15 = vld [vmem:[#allocation2 + $0x38] sm:$0xff]  ;;  %v65_v16 = vld [vmem:[%s2328_s0 + $0x30] sm:$0xff]  ;;  %v71_v20 = vld [vmem:[#allocation2] sm:$0xff]  ;;  %v194_v32 = vsub.s32 1, %v189_v31  ;;  %v190_v47 = vsub.s32 0, %v189_v31 }
  0x2b   :  { %1890 = vmatpush1.bf16.msra.mxu1 %v1901_v12  ;;  %v66_v17 = vld [vmem:[%s2328_s0 + $0x38] sm:$0xff]  ;;  %v82_v18 = vpack.c.bf16 %v78_v15, %v77_v14  ;;  %v72_v21 = vld [vmem:[#allocation2 + $0x8] sm:$0xff]  ;;  %v73_v23 = vld [vmem:[#allocation2 + $0x10] sm:$0xff] }
  0x2c   :  { %1776 = vmatpush3.bf16.msra.mxu0 %v1900_v2  ;;  %v70_v19 = vpack.c.bf16 %v66_v17, %v65_v16  ;;  %v79_v22 = vpack.c.bf16 %v72_v21, %v71_v20  ;;  %v74_v24 = vld [vmem:[#allocation2 + $0x18] sm:$0xff]  ;;  %v75_v26 = vld [vmem:[#allocation2 + $0x20] sm:$0xff]  ;;  %v76_v27 = vld [vmem:[#allocation2 + $0x28] sm:$0xff]  ;;  %1785 = vmatprep.subr.mxu1 %v2021_v29 }
  0x2d   :  { %221 = vmatprep.subr.bf16.mxu0 %v1903_v10  ;;  %v80_v25 = vpack.c.bf16 %v74_v24, %v73_v23  ;;  %v81_v28 = vpack.c.bf16 %v76_v27, %v75_v26  ;;  %v186_v33 = vld [vmem:[%s2333_s5] sm:$0x3] }
  0x2e   :  { %1705 = vmatmul.mubr.msk.bf16.vlgmr.msra.gmra.mrb[0].mxu1 %vm208_vm1, %v82_v18  ;;  %v2146_v37 = vrot.slane %v186_v33, %v194_v32  ;;  %v191_v50 = vrot.slane %v186_v33, %v190_v47  ;;  %v1693_v52 = vld [vmem:[%s2331_s3] ss:$0 sm:$0xff] }
  0x2f   :  { %1778 = vmatmul.mubr.msk.bf16.vlgmr.msra.gmra.mrb[0].mxu0 %vm106_vm0, %v68_v11  ;;  %1787 = vmatprep.mubr.msk.f32.mxu1 %vm2022_vm2, %v2021_v29 }
  0x30   :  { %1781 = vmatprep.mubr.msk.bf16.mxu0 %vm106_vm0, %v69_v13  ;;  %222 = vmatpush1.bf16.msra.mxu0 %v1901_v12 }
  0x31   :  { %1790 = vmatprep.subr.mxu0 %v2021_v29 }
  0x37   :  { %1782 = vmatmul.mubr.msk.bf16.gmra.mrb[4].mxu0 %vm106_vm0, %v70_v19 }
  0x38   :  { %253 = vmatprep.mubr.bf16.mxu0 %v2020_v0 }
  0x3f   :  { %1702 = vmatmul.mubr.msk.bf16.vlgmr.msra.gmra.mrb[8].mxu0 %vm208_vm1, %v79_v22 }
  0x40   :  { %263 = vmatprep.mubr.bf16.mxu0 %v2020_v0 }
  0x47   :  { %1703 = vmatmul.mubr.msk.bf16.gmra.mrb[12].mxu0 %vm208_vm1, %v80_v25 }
  0x48   :  { %273 = vmatprep.mubr.bf16.mxu0 %v2020_v0 }
  0x4f   :  { %1704 = vmatmul.mubr.msk.bf16.gmra.mrb[16].mxu0 %vm208_vm1, %v81_v28 }
  0x50   :  { %1792 = vmatprep.mubr.msk.f32.mxu0 %vm2022_vm2, %v2021_v29 }
 0x101   :  { %v285_v38 = vpop.f32.mrb[0].mxu1 }
 0x102   :  { %v1779_v34 = vpop.f32.mrb[0].mxu0  ;;  %v287_v40 = vpop.f32.mrb[1].mxu1  ;;  %v286_v12 = vadd.f32 %v285_v38, %v191_v50 }
 0x103   :  { %v153_v35 = vpop.f32.mrb[1].mxu0  ;;  %v2149_v41 = vadd.f32 %v287_v40, %v2146_v37  ;;  %v289_v42 = vpop.f32.mrb[2].mxu1  ;;  %v2174_v2 = vadd.f32 %v1779_v34, %v1693_v52 }
 0x104   :  { %v1780_v36 = vpop.f32.mrb[2].mxu0  ;;  %v291_v43 = vpop.f32.mrb[3].mxu1  ;;  %v2159_v58 = vadd.f32 %v1693_v52, %v153_v35  ;;  %v290_v17 = vadd.f32 %v289_v42, %v191_v50 }
 0x105   :  { %v156_v39 = vpop.f32.mrb[3].mxu0  ;;  %v2152_v44 = vadd.f32 %v291_v43, %v2146_v37  ;;  %v2183_v5 = vadd.f32 %v1780_v36, %v1693_v52 }
 0x106   :  { %v2162_v59 = vadd.f32 %v1693_v52, %v156_v39 }
 0x10a   :  { %v1783_v45 = vpop.f32.mrb[4].mxu0 }
 0x10b   :  { %v169_v46 = vpop.f32.mrb[5].mxu0  ;;  %v2204_v18 = vadd.f32 %v1783_v45, %v1693_v52 }
 0x10c   :  { %v2154_v48 = vpop.f32.mrb[6].mxu0  ;;  %v2192_v14 = vadd.f32 %v1693_v52, %v169_v46 }
 0x10d   :  { %v172_v49 = vpop.f32.mrb[7].mxu0  ;;  %v2212_v20 = vadd.f32 %v2154_v48, %v1693_v52 }
 0x10e   :  { %v2198_v16 = vadd.f32 %v1693_v52, %v172_v49 }
 0x112   :  { %v255_v51 = vpop.f32.mrb[8].mxu0 }
 0x113   :  { %v256_v53 = vadd.f32 %v255_v51, %v191_v50  ;;  %v257_v54 = vpop.f32.mrb[9].mxu0 }
 0x114   :  { %v259_v55 = vpop.f32.mrb[10].mxu0  ;;  %v258_v19 = vadd.f32 %v257_v54, %v2146_v37 }
 0x115   :  { %v260_v56 = vadd.f32 %v259_v55, %v191_v50  ;;  %v261_v57 = vpop.f32.mrb[11].mxu0  ;;  %1786 = vmatpush3.xpose.msra.mxu1 %v256_v53 }
 0x116   :  { %1805 = vmatprep.subr.mxu1 %v2021_v29  ;;  %v262_v21 = vadd.f32 %v261_v57, %v2146_v37 }
 0x117   :  { %1791 = vmatpush3.xpose.msra.mxu0 %v260_v56 }
 0x118   :  { %1788 = vmatmul.mubr.f32.vlgmr.msra.gmra.mrb[4].mxu1 %v2159_v58  ;;  %1795 = vmatprep.subr.mxu0 %v2021_v29 }
 0x119   :  { %1807 = vmatprep.mubr.msk.f32.mxu1 %vm2022_vm2, %v2021_v29 }
 0x11a   :  { %v265_v60 = vpop.f32.mrb[12].mxu0  ;;  %1793 = vmatmul.mubr.f32.vlgmr.msra.gmra.mrb[20].mxu0 %v2162_v59 }
 0x11b   :  { %v266_v61 = vadd.f32 %v265_v60, %v191_v50  ;;  %v267_v62 = vpop.f32.mrb[13].mxu0  ;;  %1797 = vmatprep.mubr.msk.f32.mxu0 %vm2022_vm2, %v2021_v29 }
 0x11c   :  { %v2172_v63 = vadd.f32 %v267_v62, %v2146_v37  ;;  %v269_v0 = vpop.f32.mrb[14].mxu0 }
 0x11d   :  { %1796 = vmatpush3.xpose.msra.mxu0 %v266_v61  ;;  %v271_v1 = vpop.f32.mrb[15].mxu0  ;;  %v270_v4 = vadd.f32 %v269_v0, %v191_v50 }
 0x11e   :  { %1800 = vmatprep.subr.mxu0 %v2021_v29  ;;  %v2178_v3 = vadd.f32 %v271_v1, %v2146_v37 }
 0x120   :  { %1798 = vmatmul.mubr.f32.vlgmr.msra.gmra.mrb[22].mxu0 %v2174_v2 }
 0x121   :  { %1801 = vmatpush3.xpose.msra.mxu0 %v270_v4  ;;  %1802 = vmatprep.mubr.msk.f32.mxu0 %vm2022_vm2, %v2021_v29 }
 0x122   :  { %v275_v6 = vpop.f32.mrb[16].mxu0  ;;  %1810 = vmatprep.subr.mxu0 %v2021_v29 }
 0x123   :  { %v276_v7 = vadd.f32 %v275_v6, %v191_v50  ;;  %v277_v8 = vpop.f32.mrb[17].mxu0 }
 0x124   :  { %v2187_v9 = vadd.f32 %v277_v8, %v2146_v37  ;;  %v279_v10 = vpop.f32.mrb[18].mxu0  ;;  %1803 = vmatmul.mubr.f32.vlgmr.msra.gmra.mrb[24].mxu0 %v2183_v5 }
 0x125   :  { %v280_v11 = vadd.f32 %v279_v10, %v191_v50  ;;  %1806 = vmatpush3.xpose.msra.mxu1 %v276_v7  ;;  %1812 = vmatprep.mubr.msk.f32.mxu0 %vm2022_vm2, %v2021_v29  ;;  %v281_v13 = vpop.f32.mrb[19].mxu0 }
 0x126   :  { %1815 = vmatprep.subr.mxu1 %v2021_v29  ;;  %v2196_v15 = vadd.f32 %v281_v13, %v2146_v37 }
 0x127   :  { %1811 = vmatpush3.xpose.msra.mxu0 %v280_v11 }
 0x128   :  { %1808 = vmatmul.mubr.f32.vlgmr.msra.gmra.mrb[6].mxu1 %v2192_v14  ;;  %1820 = vmatprep.subr.mxu0 %v2021_v29 }
 0x129   :  { %1816 = vmatpush3.xpose.msra.mxu1 %v286_v12  ;;  %1817 = vmatprep.mubr.msk.f32.mxu1 %vm2022_vm2, %v2021_v29 }
 0x12a   :  { %1813 = vmatmul.mubr.f32.vlgmr.msra.gmra.mrb[26].mxu0 %v2198_v16  ;;  %1825 = vmatprep.subr.mxu1 %v2021_v29 }
 0x12b   :  { %1821 = vmatpush3.xpose.msra.mxu0 %v290_v17  ;;  %1822 = vmatprep.mubr.msk.f32.mxu0 %vm2022_vm2, %v2021_v29 }
 0x12c   :  { %1818 = vmatmul.mubr.f32.vlgmr.msra.gmra.mrb[8].mxu1 %v2204_v18  ;;  %1830 = vmatprep.subr.mxu0 %v2021_v29 }
 0x12d   :  { %1826 = vmatpush3.msra.mxu1 %v258_v19  ;;  %1827 = vmatprep.mubr.msk.f32.mxu1 %vm2022_vm2, %v2021_v29 }
 0x12e   :  { %1823 = vmatmul.mubr.f32.vlgmr.msra.gmra.mrb[28].mxu0 %v2212_v20  ;;  %1835 = vmatprep.subr.mxu1 %v2021_v29 }
 0x12f   :  { %1831 = vmatpush3.msra.mxu0 %v262_v21  ;;  %1832 = vmatprep.mubr.msk.f32.mxu0 %vm2022_vm2, %v2021_v29 }
 0x130   :  { %1840 = vmatprep.subr.mxu0 %v2021_v29 }
 0x1eb   :  { %v360_v22 = vpop.f32.mrb[4].mxu1 }
 0x1ec   :  { %v1789_v23 = vpop.f32.mrb[5].mxu1  ;;  %v855_v24 = vsel %vm854_vm3, %v360_v22, -inf }
 0x1ed   :  { %v430_v25 = vpop.f32.mrb[20].mxu0  ;;  %856 = vmax.xlane.f32.xlu0 %v855_v24 }
 0x1ee   :  { %v1794_v26 = vpop.f32.mrb[21].mxu0  ;;  %v858_v27 = vsel %vm854_vm3, %v430_v25, -inf }
 0x1f1   :  { %859 = vmax.xlane.f32.xlu0 %v858_v27 }
 0x1f3   :  { %v500_v28 = vpop.f32.mrb[22].mxu0 }
 0x1f4   :  { %v1799_v30 = vpop.f32.mrb[23].mxu0  ;;  %v861_v31 = vsel %vm854_vm3, %v500_v28, -inf }
 0x1f5   :  { %862 = vmax.xlane.f32.xlu1 %v861_v31 }
 0x1f7   :  { %v570_v32 = vpop.f32.mrb[24].mxu0 }
 0x1f8   :  { %v1804_v33 = vpop.f32.mrb[25].mxu0  ;;  %v864_v34 = vsel %vm854_vm3, %v570_v32, -inf }
 0x1f9   :  { %865 = vmax.xlane.f32.xlu1 %v864_v34 }
 0x1fb   :  { %v640_v35 = vpop.f32.mrb[6].mxu1 }
 0x1fc   :  { %v1809_v36 = vpop.f32.mrb[7].mxu1  ;;  %v867_v37 = vsel %vm854_vm3, %v640_v35, -inf }
 0x1fd   :  { %v710_v38 = vpop.f32.mrb[26].mxu0  ;;  %868 = vmax.xlane.f32.xlu0 %v867_v37 }
 0x1fe   :  { %v1814_v39 = vpop.f32.mrb[27].mxu0  ;;  %v870_v40 = vsel %vm854_vm3, %v710_v38, -inf }
 0x1ff   :  { %871 = vmax.xlane.f32.xlu1 %v870_v40  ;;  %v780_v42 = vpop.f32.mrb[8].mxu1 }
 0x200   :  { %v1819_v43 = vpop.f32.mrb[9].mxu1  ;;  %v873_v45 = vsel %vm854_vm3, %v780_v42, -inf }
 0x201   :  { %v850_v46 = vpop.f32.mrb[28].mxu0  ;;  %874 = vmax.xlane.f32.xlu0 %v873_v45 }
 0x202   :  { %v1824_v47 = vpop.f32.mrb[29].mxu0  ;;  %v876_v48 = vsel %vm854_vm3, %v850_v46, -inf }
 0x203   :  { %877 = vmax.xlane.f32.xlu1 %v876_v48 }
 0x27a   :  { %v857_v49 = vpop.xlane.xlu0 %856 }
 0x27b   :  { %v879_v50 = vsub.f32 %v360_v22, %v857_v49 }
 0x27d   :  { %v887_v51 = vmul.f32 1.442695, %v879_v50 }
 0x27e   :  { %v860_v52 = vpop.xlane.xlu0 %859 }
 0x27f   :  { %1912 = vpow2.f32 %v887_v51  ;;  %v880_v53 = vsub.f32 %v430_v25, %v860_v52 }
 0x281   :  { %v889_v54 = vmul.f32 1.442695, %v880_v53 }
 0x282   :  { %v863_v55 = vpop.xlane.xlu1 %862 }
 0x283   :  { %1914 = vpow2.f32 %v889_v54  ;;  %v881_v56 = vsub.f32 %v500_v28, %v863_v55 }
 0x285   :  { %v891_v57 = vmul.f32 1.442695, %v881_v56 }
 0x286   :  { %v866_v60 = vpop.xlane.xlu1 %865 }
 0x287   :  { %1916 = vpow2.f32 %v891_v57  ;;  %v882_v61 = vsub.f32 %v570_v32, %v866_v60 }
 0x289   :  { %v1913_v62 = vpop.eup %1912  ;;  %v893_v0 = vmul.f32 1.442695, %v882_v61  ;;  %v1905_v61 = vld [vmem:[%s2334_s6 + $0x8] sm:$0xff]  }
 0x28a   :  { %v869_v1 = vpop.xlane.xlu0 %868  ;;  %v903_v4 = vsel %vm854_vm3, %v1913_v62, 0.0 }
 0x28b   :  { %1918 = vpow2.f32 %v893_v0  ;;  %v883_v6 = vsub.f32 %v640_v35, %v869_v1  ;;  %904 = vadd.xlane.f32.xlu0 %v903_v4  ;;  %v1909_v1 = vld [vmem:[%s2334_s6 + $0x28] sm:$0xff]   ;;  %v1910_v4 = vld [vmem:[%s2334_s6 + $0x30] sm:$0xff]  }
 0x28c   :  { %v872_v7 = vpop.xlane.xlu1 %871 }
 0x28d   :  { %v1915_v8 = vpop.eup %1914  ;;  %v895_v10 = vmul.f32 1.442695, %v883_v6  ;;  %v884_v11 = vsub.f32 %v710_v38, %v872_v7  ;;  %v1911_v6 = vld [vmem:[%s2334_s6 + $0x38] sm:$0xff]  }
 0x28e   :  { %v875_v12 = vpop.xlane.xlu0 %874  ;;  %v906_v13 = vsel %vm854_vm3, %v1915_v8, 0.0 }
 0x28f   :  { %1920 = vpow2.f32 %v895_v10  ;;  %v897_v17 = vmul.f32 1.442695, %v884_v11  ;;  %v885_v19 = vsub.f32 %v780_v42, %v875_v12  ;;  %907 = vadd.xlane.f32.xlu1 %v906_v13 }
 0x290   :  { %v878_v21 = vpop.xlane.xlu1 %877 }
 0x291   :  { %v1917_v22 = vpop.eup %1916  ;;  %1922 = vpow2.f32 %v897_v17  ;;  %v899_v23 = vmul.f32 1.442695, %v885_v19  ;;  %v886_v24 = vsub.f32 %v850_v46, %v878_v21 }
 0x292   :  { %v909_v25 = vsel %vm854_vm3, %v1917_v22, 0.0 }
 0x293   :  { %1924 = vpow2.f32 %v899_v23  ;;  %v901_v26 = vmul.f32 1.442695, %v886_v24  ;;  %910 = vadd.xlane.f32.xlu0 %v909_v25 }
 0x295   :  { %v1919_v27 = vpop.eup %1918  ;;  %1926 = vpow2.f32 %v901_v26 }
 0x296   :  { %v912_v28 = vsel %vm854_vm3, %v1919_v27, 0.0 }
 0x297   :  { %913 = vadd.xlane.f32.xlu1 %v912_v28 }
 0x299   :  { %v1921_v30 = vpop.eup %1920 }
 0x29a   :  { %v915_v31 = vsel %vm854_vm3, %v1921_v30, 0.0 }
 0x29b   :  { %v1923_v32 = vpop.eup %1922  ;;  %916 = vadd.xlane.f32.xlu0 %v915_v31 }
 0x29c   :  { %v918_v33 = vsel %vm854_vm3, %v1923_v32, 0.0 }
 0x29d   :  { %v1925_v34 = vpop.eup %1924  ;;  %919 = vadd.xlane.f32.xlu1 %v918_v33 }
 0x29e   :  { %v921_v35 = vsel %vm854_vm3, %v1925_v34, 0.0 }
 0x29f   :  { %v1927_v36 = vpop.eup %1926  ;;  %922 = vadd.xlane.f32.xlu0 %v921_v35 }
 0x2a0   :  { %v924_v37 = vsel %vm854_vm3, %v1927_v36, 0.0 }
 0x2a1   :  { %925 = vadd.xlane.f32.xlu1 %v924_v37 }
 0x318   :  { %v905_v38 = vpop.xlane.xlu0 %904 }
 0x319   :  { %1928 = vrcp.f32 %v905_v38  ;;  %v1714_v38 = vld [vmem:[%s2335_s7] ss:$0 sm:$0xff]  ;;  %s2023_s7 = smov [#allocation7]  }
 0x31a   :  { %s1680_s23 = sshll.u32 %s2023_s7, 4  ;;  %s1681_s23 = int_to_ptr.vmem [resolvable:$true] %s1680_s23 }
 0x31b   :  { %s1988_s24 = scalar_lea.vmem %s1681_s23, 1024  ;;  %p1993_p3 = scmp.lt.s32.totalorder %s1681_s23, %s1681_s23 }
 0x31c   :  { %v908_v39 = vpop.xlane.xlu1 %907  ;;  %p1989_p2 = scmp.ne.s32.totalorder %s1681_s23, %s1988_s24  ;;  %p1994_p4 = scmp.lt.s32.totalorder %s1988_s24, %s1988_s24 }
 0x31d   :  { %1930 = vrcp.f32 %v908_v39 }
 0x31e   :  { %p1995_p5 = por %p1994_p4, %p1993_p3 }
 0x320   :  { %v911_v40 = vpop.xlane.xlu0 %910  ;;  %p1996_p6 = pnand %p1995_p5, %p1989_p2 }
 0x321   :  { %1932 = vrcp.f32 %v911_v40 }
 0x323   :  { %v1929_v42 = vpop.eup %1928 }
 0x324   :  { %v935_v43 = vmul.f32 %v1929_v42, %v1913_v62  ;;  %v914_v45 = vpop.xlane.xlu1 %913 }
 0x325   :  { %1934 = vrcp.f32 %v914_v45 }
 0x326   :  { %1828 = vmatmul.mubr.msk.f32.vlgmr.msra.gmra.mrb[10].mxu1 %vm854_vm3, %v935_v43 }
 0x327   :  { %v1931_v46 = vpop.eup %1930  ;;  %1836 = vmatpush3.msra.mxu1 %v2172_v63  ;;  %1837 = vmatprep.mubr.msk.f32.mxu1 %vm2022_vm2, %v2021_v29 }
 0x328   :  { %v936_v47 = vmul.f32 %v1931_v46, %v1915_v8  ;;  %v917_v48 = vpop.xlane.xlu0 %916  ;;  %1845 = vmatprep.subr.mxu1 %v2021_v29 }
 0x329   :  { %1936 = vrcp.f32 %v917_v48 }
 0x32a   :  { %1833 = vmatmul.mubr.msk.f32.vlgmr.msra.gmra.mrb[30].mxu0 %vm854_vm3, %v936_v47  ;;  %v920_v49 = vpop.xlane.xlu1 %919 }
 0x32b   :  { %v1933_v50 = vpop.eup %1932  ;;  %1841 = vmatpush3.msra.mxu0 %v2178_v3  ;;  %1938 = vrcp.f32 %v920_v49  ;;  %1842 = vmatprep.mubr.msk.f32.mxu0 %vm2022_vm2, %v2021_v29 }
 0x32c   :  { %v937_v51 = vmul.f32 %v1933_v50, %v1917_v22  ;;  %v923_v63 = vpop.xlane.xlu0 %922  ;;  %1850 = vmatprep.subr.mxu0 %v2021_v29 }
 0x32d   :  { %1940 = vrcp.f32 %v923_v63 }
 0x32e   :  { %v926_v52 = vpop.xlane.xlu1 %925  ;;  %1838 = vmatmul.mubr.msk.f32.vlgmr.msra.gmra.mrb[12].mxu1 %vm854_vm3, %v937_v51 }
 0x32f   :  { %v1935_v53 = vpop.eup %1934  ;;  %1942 = vrcp.f32 %v926_v52  ;;  %1846 = vmatpush3.msra.mxu1 %v2187_v9  ;;  %1847 = vmatprep.mubr.msk.f32.mxu1 %vm2022_vm2, %v2021_v29  ;;  %v1904_v9 = vld [vmem:[%s2334_s6] sm:$0xff]  }
 0x330   :  { %v938_v3 = vmul.f32 %v1935_v53, %v1919_v27  ;;  %1855 = vmatprep.subr.mxu1 %v2021_v29 }
 0x332   :  { %1843 = vmatmul.mubr.msk.f32.vlgmr.msra.gmra.mrb[32].mxu0 %vm854_vm3, %v938_v3 }
 0x333   :  { %v1937_v54 = vpop.eup %1936  ;;  %1851 = vmatpush3.msra.mxu0 %v2196_v15  ;;  %1852 = vmatprep.mubr.msk.f32.mxu0 %vm2022_vm2, %v2021_v29 }
 0x334   :  { %v939_v55 = vmul.f32 %v1937_v54, %v1921_v30  ;;  %1860 = vmatprep.subr.mxu0 %v2021_v29 }
 0x335   :  { %v1939_v56 = vpop.eup %1938 }
 0x336   :  { %v940_v57 = vmul.f32 %v1939_v56, %v1923_v32  ;;  %1848 = vmatmul.mubr.msk.f32.vlgmr.msra.gmra.mrb[14].mxu1 %vm854_vm3, %v939_v55 }
 0x337   :  { %v1941_v60 = vpop.eup %1940  ;;  %1856 = vmatpush3.msra.mxu1 %v2149_v41  ;;  %1857 = vmatprep.mubr.msk.f32.mxu1 %vm2022_vm2, %v2021_v29  ;;  %v1906_v41 = vld [vmem:[%s2334_s6 + $0x10] sm:$0xff]  }
 0x338   :  { %v941_v15 = vmul.f32 %v1941_v60, %v1925_v34  ;;  %1853 = vmatmul.mubr.msk.f32.vlgmr.msra.gmra.mrb[34].mxu0 %vm854_vm3, %v940_v57  ;;  %1865 = vmatprep.subr.bf16.mxu1 %v1904_v9 }
 0x339   :  { %v1943_v62 = vpop.eup %1942  ;;  %1861 = vmatpush3.msra.mxu0 %v2152_v44  ;;  %1862 = vmatprep.mubr.msk.f32.mxu0 %vm2022_vm2, %v2021_v29  ;;  %v1907_v44 = vld [vmem:[%s2334_s6 + $0x18] sm:$0xff]   ;;  %v1908_v29 = vld [vmem:[%s2334_s6 + $0x20] sm:$0xff]  }
 0x33a   :  { %v942_v0 = vmul.f32 %v1943_v62, %v1927_v36  ;;  %1858 = vmatmul.mubr.msk.f32.vlgmr.msra.gmra.mrb[16].mxu1 %vm854_vm3, %v941_v15 }
 0x33b   :  { %1866 = vmatpush3.bf16.msra.mxu1 %v1904_v9 }
 0x33c   :  { %1863 = vmatmul.mubr.msk.f32.vlgmr.msra.gmra.mrb[36].mxu0 %vm854_vm3, %v942_v0  ;;  %1867 = vmatprep.subr.bf16.mxu1 %v1905_v61 }
 0x33f   :  { %1868 = vmatpush3.bf16.msra.mxu1 %v1905_v61 }
 0x340   :  { %1869 = vmatprep.subr.bf16.mxu1 %v1906_v41 }
 0x343   :  { %1870 = vmatpush3.bf16.msra.mxu1 %v1906_v41 }
 0x344   :  { %1871 = vmatprep.subr.bf16.mxu1 %v1907_v44 }
 0x347   :  { %1872 = vmatpush3.bf16.msra.mxu1 %v1907_v44 }
 0x348   :  { %1873 = vmatprep.subr.bf16.mxu1 %v1908_v29 }
 0x34b   :  { %1874 = vmatpush3.bf16.msra.mxu1 %v1908_v29 }
 0x34c   :  { %1875 = vmatprep.subr.bf16.mxu1 %v1909_v1 }
 0x34f   :  { %1876 = vmatpush3.bf16.msra.mxu1 %v1909_v1 }
 0x350   :  { %1877 = vmatprep.subr.bf16.mxu1 %v1910_v4 }
 0x353   :  { %1878 = vmatpush3.bf16.msra.mxu1 %v1910_v4 }
 0x354   :  { %1879 = vmatprep.subr.bf16.mxu1 %v1911_v6 }
 0x357   :  { %1880 = vmatpush3.bf16.msra.mxu1 %v1911_v6 }
 0x3f9   :  { %v1012_v7 = vpop.f32.mrb[10].mxu1 }
 0x3fa   :  { %v1829_v8 = vpop.f32.mrb[11].mxu1  ;;  %v1013_v11 = vadd.f32 %v1012_v7, %v2159_v58 }
 0x3fd   :  { %v1085_v10 = vpop.f32.mrb[30].mxu0 }
 0x3fe   :  { %v1086_v12 = vadd.f32 %v1085_v10, %v2162_v59  ;;  %v1834_v13 = vpop.f32.mrb[31].mxu0 }
 0x400   :  { %v1527_v17 = vpack.c.bf16 %v1086_v12, %v1013_v11 }
 0x401   :  { %v1158_v19 = vpop.f32.mrb[12].mxu1 }
 0x402   :  { %v1839_v21 = vpop.f32.mrb[13].mxu1  ;;  %1881 = vmatprep.mubr.bf16.mxu1 %v1527_v17  ;;  %v1159_v23 = vadd.f32 %v1158_v19, %v2174_v2 }
 0x405   :  { %v1231_v22 = vpop.f32.mrb[32].mxu0 }
 0x406   :  { %v1232_v24 = vadd.f32 %v1231_v22, %v2183_v5  ;;  %v1844_v25 = vpop.f32.mrb[33].mxu0 }
 0x408   :  { %v1528_v26 = vpack.c.bf16 %v1232_v24, %v1159_v23 }
 0x409   :  { %v1304_v27 = vpop.f32.mrb[14].mxu1 }
 0x40a   :  { %v1849_v28 = vpop.f32.mrb[15].mxu1  ;;  %1882 = vmatmul.mubr.bf16.vlgmr.msra.gmra.mrb[20].mxu1 %v1528_v26  ;;  %v1305_v58 = vadd.f32 %v1304_v27, %v2192_v14 }
 0x40b   :  { %v1377_v30 = vpop.f32.mrb[34].mxu0 }
 0x40c   :  { %v1378_v59 = vadd.f32 %v1377_v30, %v2198_v16  ;;  %v1854_v31 = vpop.f32.mrb[35].mxu0 }
 0x40d   :  { %v1450_v32 = vpop.f32.mrb[16].mxu1 }
 0x40e   :  { %v1529_v33 = vpack.c.bf16 %v1378_v59, %v1305_v58  ;;  %v1859_v34 = vpop.f32.mrb[17].mxu1  ;;  %v1451_v36 = vadd.f32 %v1450_v32, %v2204_v18 }
 0x40f   :  { %v1523_v35 = vpop.f32.mrb[36].mxu0 }
 0x410   :  { %v1524_v2 = vadd.f32 %v1523_v35, %v2212_v20  ;;  %v1864_v5 = vpop.f32.mrb[37].mxu0  ;;  %1885 = vmatprep.mubr.bf16.mxu1 %v1529_v33 }
 0x412   :  { %v1530_v37 = vpack.c.bf16 %v1524_v2, %v1451_v36 }
 0x414   :  { %1886 = vmatmul.mubr.bf16.gmra.mrb[24].mxu1 %v1530_v37 }
 0x4dd   :  { %v1883_v14 = vpop.f32.mrb[20].mxu1 }
 0x4de   :  { %v1645_v39 = vadd.f32 %v1883_v14, %v1714_v38  ;;  %v1636_v16 = vpop.f32.mrb[21].mxu1 }
 0x4df   :  { %v1637_v40 = vadd.f32 %v1714_v38, %v1636_v16  ;;  %v1884_v42 = vpop.f32.mrb[22].mxu1 }
 0x4e0   :  { %1669 = vst.msk [vmem:[#allocation7 + $0x10] sm:$0xff] %vm106_vm0, %v1645_v39  ;;  %v1648_v43 = vadd.f32 %v1884_v42, %v1714_v38  ;;  %v1639_v45 = vpop.f32.mrb[23].mxu1 }
 0x4e1   :  { %1667 = vst.msk [vmem:[#allocation7] sm:$0xff] %vm106_vm0, %v1637_v40  ;;  %v1640_v18 = vadd.f32 %v1714_v38, %v1639_v45 }
 0x4e2   :  { %1670 = vst.msk [vmem:[#allocation7 + $0x18] sm:$0xff] %vm106_vm0, %v1648_v43 }
 0x4e3   :  { %1668 = vst.msk [vmem:[#allocation7 + $0x8] sm:$0xff] %vm106_vm0, %v1640_v18 }
 0x4e7   :  { %v1887_v20 = vpop.f32.mrb[24].mxu1 }
 0x4e8   :  { %v1661_v46 = vadd.f32 %v1887_v20, %v1714_v38  ;;  %v1652_v47 = vpop.f32.mrb[25].mxu1 }
 0x4e9   :  { %v1653_v48 = vadd.f32 %v1714_v38, %v1652_v47  ;;  %v1888_v49 = vpop.f32.mrb[26].mxu1 }
 0x4ea   :  { %1673 = vst.msk [vmem:[#allocation7 + $0x30] sm:$0xff] %vm106_vm0, %v1661_v46  ;;  %v1664_v50 = vadd.f32 %v1888_v49, %v1714_v38  ;;  %v1655_v51 = vpop.f32.mrb[27].mxu1 }
 0x4eb   :  { %1671 = vst.msk [vmem:[#allocation7 + $0x20] sm:$0xff] %vm106_vm0, %v1653_v48  ;;  %v1656_v63 = vadd.f32 %v1714_v38, %v1655_v51 }
 0x4ec   :  { %1674 = vst.msk [vmem:[#allocation7 + $0x38] sm:$0xff] %vm106_vm0, %v1664_v50 }
 0x4ed   :  { %1672 = vst.msk [vmem:[#allocation7 + $0x28] sm:$0xff] %vm106_vm0, %v1656_v63 }
 0x4ee   :  { %1999 = shalt.err (!%p1996_p6)
}
 0x4ef   :  { %s2000_s27 = scalar_lea.hbm %s2336_s8, 1024 }
 0x4f0   :  { %p2001_p7 = scmp.ne.s32.totalorder %s2336_s8, %s2000_s27  ;;  %p2004_p8 = scmp.lt.u32.totalorder %s2000_s27, %s2336_s8 }
 0x4f2   :  { %p2006_p9 = pnand %p2004_p8, %p2001_p7 }
 0x4f4   :  { %2009 = shalt.err (!%p2006_p9)
}
 0x4f5   :  { %1686 = dma.vmem_to_hbm [thread:$0]  %s1681_s23, 1024, %s2336_s8, [#allocation4], %s2017_s15, %s2017_s15, %s2018_s16  }
 0x4f6   :  { %2014 = dma.done.wait [#allocation4], 1024  }
 0x4f7   :  { %2015 = vsyncadd [#allocation4], 4294966272 }
 0x4f8   :  { %1690 = vsyncpa [#allocation3], 1 }
 0x4f9   :  { %1691 = vsyncpa [#allocation6], 1 }
 0x4fa   :  { %1692 = vsyncpa [#allocation4], 1 }

</bundles_post_ra>
